<compile_context>
chip_gen: v6e
topology: v6e:2x2x1
jax: 0.10.0
libtpu: 0.0.40
codegen_flags: <defaults>
</compile_context>

<pallas_src>
import functools

import jax
import jax.numpy as jnp
from jax.experimental import pallas as pl
from jax.experimental.pallas import tpu as pltpu


# ----------------------------- Pallas kernel ------------------------------- #

def fused_lstm_mlp_kernel(*refs, num_layers, hidden_dim, seq_len, batch):
    """Fused forward: num_layers LSTM layers + (fc->bn->relu)x3 + fc4 -> sigmoid.

    refs layout (all VMEM-resident, full-array blocks):
      refs[0]               : x       (T*B, D)   time-major, flattened
      refs[1 + 3*l + 0]     : W_ih^T  (D_l, 4H)  for layer l (PyTorch gate order i,f,g,o)
      refs[1 + 3*l + 1]     : W_hh^T  (H, 4H)
      refs[1 + 3*l + 2]     : bias    (1, 4H)    (b_ih + b_hh)
      next 8                : folded MLP params w1,b1,w2,b2,w3,b3,w4,b4
                              (BN folded into w1..w3/b1..b3, 1/temperature folded into w4/b4;
                               layouts (in,out) / (1,out))
      refs[-1]              : output  (B, 1)
    """
    T, B, H = seq_len, batch, hidden_dim
    x_ref = refs[0]
    lstm_refs = refs[1:1 + 3 * num_layers]
    (w1_ref, b1_ref, w2_ref, b2_ref,
     w3_ref, b3_ref, w4_ref, b4_ref) = refs[1 + 3 * num_layers:-1]
    o_ref = refs[-1]

    seq = x_ref[...]                                   # (T*B, D_in) time-major

    h = None
    for layer in range(num_layers):
        wih = lstm_refs[3 * layer][...]                # (D_l, 4H)
        whh = lstm_refs[3 * layer + 1][...]            # (H, 4H)
        bias = lstm_refs[3 * layer + 2][...]           # (1, 4H)

        # Hoisted input projection: one big matmul per layer, bias folded in.
        xg = jnp.dot(seq, wih, preferred_element_type=jnp.float32) + bias   # (T*B, 4H)

        h = jnp.zeros((B, H), jnp.float32)
        c = jnp.zeros((B, H), jnp.float32)
        is_last = layer == num_layers - 1
        hs = []
        # T is static & small: fully unrolled so the scheduler can overlap steps.
        for t in range(T):
            gates = xg[t * B:(t + 1) * B, :] + jnp.dot(
                h, whh, preferred_element_type=jnp.float32)                  # (B, 4H)
            # Full-width sigmoid on the EUP (i, f, o live in 3 of the 4 quarters);
            # tanh only on the "g" quarter.
            sg = jax.nn.sigmoid(gates)
            i = sg[:, 0:H]
            f = sg[:, H:2 * H]
            o = sg[:, 3 * H:4 * H]
            g = jnp.tanh(gates[:, 2 * H:3 * H])
            c = f * c + i * g
            h = o * jnp.tanh(c)
            if not is_last:
                hs.append(h)
        if not is_last:
            seq = jnp.concatenate(hs, axis=0)          # (T*B, H), time-major
        # (inter-layer dropout is identity at inference)

    # MLP head on the final hidden state; BatchNorm already folded into w/b,
    # temperature already folded into w4/b4.
    z = h
    z = jnp.maximum(
        jnp.dot(z, w1_ref[...], preferred_element_type=jnp.float32) + b1_ref[...], 0.0)
    z = jnp.maximum(
        jnp.dot(z, w2_ref[...], preferred_element_type=jnp.float32) + b2_ref[...], 0.0)
    z = jnp.maximum(
        jnp.dot(z, w3_ref[...], preferred_element_type=jnp.float32) + b3_ref[...], 0.0)
    z = jnp.dot(z, w4_ref[...], preferred_element_type=jnp.float32) + b4_ref[...]
    o_ref[...] = jax.nn.sigmoid(z)


# ------------------------------ wrapper ------------------------------------ #

_VMEM = pl.BlockSpec(memory_space=pltpu.MemorySpace.VMEM)


def lstm_module_forward(x_btd, lstm_params, mlp_params, hidden_dim):
    """x_btd: (B, T, D) batch_first, like the PyTorch module. Returns (B, 1)."""
    B, T, D = x_btd.shape
    num_layers = len(lstm_params)
    # Time-major, flattened so the hoisted projection is a single (T*B, D) matmul.
    x_flat = jnp.transpose(x_btd, (1, 0, 2)).reshape(T * B, D)
    flat_lstm = [a for layer in lstm_params for a in layer]

    kernel = functools.partial(
        fused_lstm_mlp_kernel,
        num_layers=num_layers, hidden_dim=hidden_dim, seq_len=T, batch=B)

    n_inputs = 1 + len(flat_lstm) + len(mlp_params)
    return pl.pallas_call(
        kernel,
        out_shape=jax.ShapeDtypeStruct((B, 1), jnp.float32),
        in_specs=[_VMEM] * n_inputs,
        out_specs=_VMEM,
    )(x_flat, *flat_lstm, *mlp_params)


# ----------------------- deterministic parameter setup --------------------- #

def make_params(key, input_dim, hidden_dim, num_layers, temperature):
    def u(k, shape, scale=0.1):
        return jax.random.uniform(k, shape, jnp.float32, -scale, scale)

    keys = iter(jax.random.split(key, 64))

    lstm_params = []
    lstm_raw = []
    d_in = input_dim
    for _ in range(num_layers):
        w_ih = u(next(keys), (4 * hidden_dim, d_in))
        w_hh = u(next(keys), (4 * hidden_dim, hidden_dim))
        b_ih = u(next(keys), (4 * hidden_dim,))
        b_hh = u(next(keys), (4 * hidden_dim,))
        lstm_raw.append((w_ih, w_hh, b_ih, b_hh))
        lstm_params.append((w_ih.T, w_hh.T, (b_ih + b_hh)[None, :]))
        d_in = hidden_dim

    def linear(k, fin, fout):
        k1, k2 = jax.random.split(k)
        return u(k1, (fout, fin)), u(k2, (fout,))

    def bn(k, c):
        k1, k2, k3, k4 = jax.random.split(k, 4)
        gamma = 1.0 + u(k1, (c,))
        beta = u(k2, (c,))
        mean = u(k3, (c,))
        var = 0.5 + jax.random.uniform(k4, (c,), jnp.float32, 0.0, 1.0)
        scale = gamma / jnp.sqrt(var + 1e-5)
        shift = beta - mean * scale
        return scale, shift, (gamma, beta, mean, var)

    w1, b1 = linear(next(keys), hidden_dim, 256)
    s1, t1, bn1 = bn(next(keys), 256)
    w2, b2 = linear(next(keys), 256, 128)
    s2, t2, bn2 = bn(next(keys), 128)
    w3, b3 = linear(next(keys), 128, 64)
    s3, t3, bn3 = bn(next(keys), 64)
    w4, b4 = linear(next(keys), 64, 1)

    # Fold BatchNorm (inference, running stats) into the fc weights/biases:
    #   (x @ w.T + b) * s + t  ==  x @ (w.T * s) + (b*s + t)
    def fold(w, b, s, t):
        return w.T * s[None, :], (b * s + t)[None, :]

    w1f, b1f = fold(w1, b1, s1, t1)
    w2f, b2f = fold(w2, b2, s2, t2)
    w3f, b3f = fold(w3, b3, s3, t3)
    # Fold the temperature division into fc4: sigmoid((x@w4.T + b4)/T) == sigmoid(x@(w4.T/T) + b4/T)
    inv_t = 1.0 / float(temperature)
    w4f, b4f = w4.T * inv_t, (b4 * inv_t)[None, :]

    mlp_params = (w1f, b1f, w2f, b2f, w3f, b3f, w4f, b4f)
    mlp_raw = ((w1, b1, bn1), (w2, b2, bn2), (w3, b3, bn3), (w4, b4))
    return lstm_params, mlp_params, lstm_raw, mlp_raw


# ------------------------------ pure-JAX reference -------------------------- #

def reference_forward(x, lstm_raw, mlp_raw, temperature):
    B, T, _ = x.shape
    seq = x
    for (w_ih, w_hh, b_ih, b_hh) in lstm_raw:
        H = w_hh.shape[1]
        h = jnp.zeros((B, H), jnp.float32)
        c = jnp.zeros((B, H), jnp.float32)
        hs = []
        for t in range(T):
            gates = seq[:, t, :] @ w_ih.T + b_ih + h @ w_hh.T + b_hh
            i, f, g, o = jnp.split(gates, 4, axis=1)
            c = jax.nn.sigmoid(f) * c + jax.nn.sigmoid(i) * jnp.tanh(g)
            h = jax.nn.sigmoid(o) * jnp.tanh(c)
            hs.append(h)
        seq = jnp.stack(hs, axis=1)
    z = seq[:, -1, :]
    (w1, b1, bn1), (w2, b2, bn2), (w3, b3, bn3), (w4, b4) = mlp_raw
    for (w, b, bnp) in ((w1, b1, bn1), (w2, b2, bn2), (w3, b3, bn3)):
        gamma, beta, mean, var = bnp
        z = z @ w.T + b
        z = gamma * (z - mean) / jnp.sqrt(var + 1e-5) + beta
        z = jnp.maximum(z, 0.0)
    z = z @ w4.T + b4
    return jax.nn.sigmoid(z / temperature)


# ---------------------------------- main ------------------------------------ #

if __name__ == "__main__":
    B, T = 2, 8
    input_dim, hidden_dim, num_layers = 8, 32, 2
    temperature = 2.0

    key = jax.random.PRNGKey(0)
    k_x, k_p = jax.random.split(key)
    x = jax.random.normal(k_x, (B, T, input_dim), jnp.float32)

    lstm_params, mlp_params, lstm_raw, mlp_raw = make_params(
        k_p, input_dim, hidden_dim, num_layers, temperature)

    fwd = jax.jit(lambda inp: lstm_module_forward(inp, lstm_params, mlp_params, hidden_dim))
    out = jax.block_until_ready(fwd(x))

    ref = reference_forward(x, lstm_raw, mlp_raw, temperature)
    assert out.shape == (B, 1)
    assert jnp.allclose(out, ref, atol=1e-4, rtol=1e-4), (out, ref)

    print("KERNEL_OK")
</pallas_src>

<mosaic_0001>
module attributes {stable_mosaic.version = 11 : i64} {
  func.func @fused_lstm_mlp_kernel(%arg0: memref<16x8xf32, #tpu.memory_space<vmem>>, %arg1: memref<8x128xf32, #tpu.memory_space<vmem>>, %arg2: memref<32x128xf32, #tpu.memory_space<vmem>>, %arg3: memref<1x128xf32, #tpu.memory_space<vmem>>, %arg4: memref<32x128xf32, #tpu.memory_space<vmem>>, %arg5: memref<32x128xf32, #tpu.memory_space<vmem>>, %arg6: memref<1x128xf32, #tpu.memory_space<vmem>>, %arg7: memref<32x256xf32, #tpu.memory_space<vmem>>, %arg8: memref<1x256xf32, #tpu.memory_space<vmem>>, %arg9: memref<256x128xf32, #tpu.memory_space<vmem>>, %arg10: memref<1x128xf32, #tpu.memory_space<vmem>>, %arg11: memref<128x64xf32, #tpu.memory_space<vmem>>, %arg12: memref<1x64xf32, #tpu.memory_space<vmem>>, %arg13: memref<64x1xf32, #tpu.memory_space<vmem>>, %arg14: memref<1x1xf32, #tpu.memory_space<vmem>>, %arg15: memref<2x1xf32, #tpu.memory_space<vmem>>) attributes {dimension_semantics = [], scalar_prefetch = 0 : i64, scratch_operands = 0 : i64, tpu.core_type = #tpu.core_type<tc>} {
    %c0 = arith.constant 0 : index
    %c0_0 = arith.constant 0 : index
    %0 = vector.load %arg0[%c0, %c0_0] : memref<16x8xf32, #tpu.memory_space<vmem>>, vector<16x8xf32>
    %c0_1 = arith.constant 0 : index
    %c0_2 = arith.constant 0 : index
    %1 = vector.load %arg1[%c0_1, %c0_2] : memref<8x128xf32, #tpu.memory_space<vmem>>, vector<8x128xf32>
    %c0_3 = arith.constant 0 : index
    %c0_4 = arith.constant 0 : index
    %2 = vector.load %arg2[%c0_3, %c0_4] : memref<32x128xf32, #tpu.memory_space<vmem>>, vector<32x128xf32>
    %c0_5 = arith.constant 0 : index
    %c0_6 = arith.constant 0 : index
    %3 = vector.load %arg3[%c0_5, %c0_6] : memref<1x128xf32, #tpu.memory_space<vmem>>, vector<1x128xf32>
    %cst = arith.constant dense<0.000000e+00> : vector<16x128xf32>
    %4 = tpu.matmul %0, %1, %cst {dimension_numbers = #tpu.dot_dimension_numbers<[1], [0], [0], [1], [0, 0, 1, 1], [], []>} : vector<16x8xf32>, vector<8x128xf32>, vector<16x128xf32> -> vector<16x128xf32>
    %5 = vector.broadcast %3 : vector<1x128xf32> to vector<16x128xf32>
    %6 = arith.addf %4, %5 : vector<16x128xf32>
    %cst_7 = arith.constant 0.000000e+00 : f32
    %7 = vector.broadcast %cst_7 : f32 to vector<2x32xf32>
    %cst_8 = arith.constant 0.000000e+00 : f32
    %8 = vector.broadcast %cst_8 : f32 to vector<2x32xf32>
    %9 = vector.extract_strided_slice %6 {offsets = [0, 0], sizes = [2, 128], strides = [1, 1]} : vector<16x128xf32> to vector<2x128xf32>
    %cst_9 = arith.constant dense<0.000000e+00> : vector<2x128xf32>
    %10 = tpu.matmul %7, %2, %cst_9 {dimension_numbers = #tpu.dot_dimension_numbers<[1], [0], [0], [1], [0, 0, 1, 1], [], []>} : vector<2x32xf32>, vector<32x128xf32>, vector<2x128xf32> -> vector<2x128xf32>
    %11 = arith.addf %9, %10 : vector<2x128xf32>
    %12 = arith.negf %11 : vector<2x128xf32>
    %13 = math.exp %12 : vector<2x128xf32>
    %cst_10 = arith.constant 1.000000e+00 : f32
    %14 = vector.broadcast %cst_10 : f32 to vector<2x128xf32>
    %15 = arith.addf %14, %13 : vector<2x128xf32>
    %16 = arith.divf %14, %15 : vector<2x128xf32>
    %17 = vector.extract_strided_slice %16 {offsets = [0, 0], sizes = [2, 32], strides = [1, 1]} : vector<2x128xf32> to vector<2x32xf32>
    %18 = vector.extract_strided_slice %16 {offsets = [0, 32], sizes = [2, 32], strides = [1, 1]} : vector<2x128xf32> to vector<2x32xf32>
    %19 = vector.extract_strided_slice %16 {offsets = [0, 96], sizes = [2, 32], strides = [1, 1]} : vector<2x128xf32> to vector<2x32xf32>
    %20 = vector.extract_strided_slice %11 {offsets = [0, 64], sizes = [2, 32], strides = [1, 1]} : vector<2x128xf32> to vector<2x32xf32>
    %21 = math.tanh %20 : vector<2x32xf32>
    %22 = arith.mulf %18, %8 : vector<2x32xf32>
    %23 = arith.mulf %17, %21 : vector<2x32xf32>
    %24 = arith.addf %22, %23 : vector<2x32xf32>
    %25 = math.tanh %24 : vector<2x32xf32>
    %26 = arith.mulf %19, %25 : vector<2x32xf32>
    %27 = vector.extract_strided_slice %6 {offsets = [2, 0], sizes = [2, 128], strides = [1, 1]} : vector<16x128xf32> to vector<2x128xf32>
    %cst_11 = arith.constant dense<0.000000e+00> : vector<2x128xf32>
    %28 = tpu.matmul %26, %2, %cst_11 {dimension_numbers = #tpu.dot_dimension_numbers<[1], [0], [0], [1], [0, 0, 1, 1], [], []>} : vector<2x32xf32>, vector<32x128xf32>, vector<2x128xf32> -> vector<2x128xf32>
    %29 = arith.addf %27, %28 : vector<2x128xf32>
    %30 = arith.negf %29 : vector<2x128xf32>
    %31 = math.exp %30 : vector<2x128xf32>
    %cst_12 = arith.constant 1.000000e+00 : f32
    %32 = vector.broadcast %cst_12 : f32 to vector<2x128xf32>
    %33 = arith.addf %32, %31 : vector<2x128xf32>
    %34 = arith.divf %32, %33 : vector<2x128xf32>
    %35 = vector.extract_strided_slice %34 {offsets = [0, 0], sizes = [2, 32], strides = [1, 1]} : vector<2x128xf32> to vector<2x32xf32>
    %36 = vector.extract_strided_slice %34 {offsets = [0, 32], sizes = [2, 32], strides = [1, 1]} : vector<2x128xf32> to vector<2x32xf32>
    %37 = vector.extract_strided_slice %34 {offsets = [0, 96], sizes = [2, 32], strides = [1, 1]} : vector<2x128xf32> to vector<2x32xf32>
    %38 = vector.extract_strided_slice %29 {offsets = [0, 64], sizes = [2, 32], strides = [1, 1]} : vector<2x128xf32> to vector<2x32xf32>
    %39 = math.tanh %38 : vector<2x32xf32>
    %40 = arith.mulf %36, %24 : vector<2x32xf32>
    %41 = arith.mulf %35, %39 : vector<2x32xf32>
    %42 = arith.addf %40, %41 : vector<2x32xf32>
    %43 = math.tanh %42 : vector<2x32xf32>
    %44 = arith.mulf %37, %43 : vector<2x32xf32>
    %45 = vector.extract_strided_slice %6 {offsets = [4, 0], sizes = [2, 128], strides = [1, 1]} : vector<16x128xf32> to vector<2x128xf32>
    %cst_13 = arith.constant dense<0.000000e+00> : vector<2x128xf32>
    %46 = tpu.matmul %44, %2, %cst_13 {dimension_numbers = #tpu.dot_dimension_numbers<[1], [0], [0], [1], [0, 0, 1, 1], [], []>} : vector<2x32xf32>, vector<32x128xf32>, vector<2x128xf32> -> vector<2x128xf32>
    %47 = arith.addf %45, %46 : vector<2x128xf32>
    %48 = arith.negf %47 : vector<2x128xf32>
    %49 = math.exp %48 : vector<2x128xf32>
    %cst_14 = arith.constant 1.000000e+00 : f32
    %50 = vector.broadcast %cst_14 : f32 to vector<2x128xf32>
    %51 = arith.addf %50, %49 : vector<2x128xf32>
    %52 = arith.divf %50, %51 : vector<2x128xf32>
    %53 = vector.extract_strided_slice %52 {offsets = [0, 0], sizes = [2, 32], strides = [1, 1]} : vector<2x128xf32> to vector<2x32xf32>
    %54 = vector.extract_strided_slice %52 {offsets = [0, 32], sizes = [2, 32], strides = [1, 1]} : vector<2x128xf32> to vector<2x32xf32>
    %55 = vector.extract_strided_slice %52 {offsets = [0, 96], sizes = [2, 32], strides = [1, 1]} : vector<2x128xf32> to vector<2x32xf32>
    %56 = vector.extract_strided_slice %47 {offsets = [0, 64], sizes = [2, 32], strides = [1, 1]} : vector<2x128xf32> to vector<2x32xf32>
    %57 = math.tanh %56 : vector<2x32xf32>
    %58 = arith.mulf %54, %42 : vector<2x32xf32>
    %59 = arith.mulf %53, %57 : vector<2x32xf32>
    %60 = arith.addf %58, %59 : vector<2x32xf32>
    %61 = math.tanh %60 : vector<2x32xf32>
    %62 = arith.mulf %55, %61 : vector<2x32xf32>
    %63 = vector.extract_strided_slice %6 {offsets = [6, 0], sizes = [2, 128], strides = [1, 1]} : vector<16x128xf32> to vector<2x128xf32>
    %cst_15 = arith.constant dense<0.000000e+00> : vector<2x128xf32>
    %64 = tpu.matmul %62, %2, %cst_15 {dimension_numbers = #tpu.dot_dimension_numbers<[1], [0], [0], [1], [0, 0, 1, 1], [], []>} : vector<2x32xf32>, vector<32x128xf32>, vector<2x128xf32> -> vector<2x128xf32>
    %65 = arith.addf %63, %64 : vector<2x128xf32>
    %66 = arith.negf %65 : vector<2x128xf32>
    %67 = math.exp %66 : vector<2x128xf32>
    %cst_16 = arith.constant 1.000000e+00 : f32
    %68 = vector.broadcast %cst_16 : f32 to vector<2x128xf32>
    %69 = arith.addf %68, %67 : vector<2x128xf32>
    %70 = arith.divf %68, %69 : vector<2x128xf32>
    %71 = vector.extract_strided_slice %70 {offsets = [0, 0], sizes = [2, 32], strides = [1, 1]} : vector<2x128xf32> to vector<2x32xf32>
    %72 = vector.extract_strided_slice %70 {offsets = [0, 32], sizes = [2, 32], strides = [1, 1]} : vector<2x128xf32> to vector<2x32xf32>
    %73 = vector.extract_strided_slice %70 {offsets = [0, 96], sizes = [2, 32], strides = [1, 1]} : vector<2x128xf32> to vector<2x32xf32>
    %74 = vector.extract_strided_slice %65 {offsets = [0, 64], sizes = [2, 32], strides = [1, 1]} : vector<2x128xf32> to vector<2x32xf32>
    %75 = math.tanh %74 : vector<2x32xf32>
    %76 = arith.mulf %72, %60 : vector<2x32xf32>
    %77 = arith.mulf %71, %75 : vector<2x32xf32>
    %78 = arith.addf %76, %77 : vector<2x32xf32>
    %79 = math.tanh %78 : vector<2x32xf32>
    %80 = arith.mulf %73, %79 : vector<2x32xf32>
    %81 = vector.extract_strided_slice %6 {offsets = [8, 0], sizes = [2, 128], strides = [1, 1]} : vector<16x128xf32> to vector<2x128xf32>
    %cst_17 = arith.constant dense<0.000000e+00> : vector<2x128xf32>
    %82 = tpu.matmul %80, %2, %cst_17 {dimension_numbers = #tpu.dot_dimension_numbers<[1], [0], [0], [1], [0, 0, 1, 1], [], []>} : vector<2x32xf32>, vector<32x128xf32>, vector<2x128xf32> -> vector<2x128xf32>
    %83 = arith.addf %81, %82 : vector<2x128xf32>
    %84 = arith.negf %83 : vector<2x128xf32>
    %85 = math.exp %84 : vector<2x128xf32>
    %cst_18 = arith.constant 1.000000e+00 : f32
    %86 = vector.broadcast %cst_18 : f32 to vector<2x128xf32>
    %87 = arith.addf %86, %85 : vector<2x128xf32>
    %88 = arith.divf %86, %87 : vector<2x128xf32>
    %89 = vector.extract_strided_slice %88 {offsets = [0, 0], sizes = [2, 32], strides = [1, 1]} : vector<2x128xf32> to vector<2x32xf32>
    %90 = vector.extract_strided_slice %88 {offsets = [0, 32], sizes = [2, 32], strides = [1, 1]} : vector<2x128xf32> to vector<2x32xf32>
    %91 = vector.extract_strided_slice %88 {offsets = [0, 96], sizes = [2, 32], strides = [1, 1]} : vector<2x128xf32> to vector<2x32xf32>
    %92 = vector.extract_strided_slice %83 {offsets = [0, 64], sizes = [2, 32], strides = [1, 1]} : vector<2x128xf32> to vector<2x32xf32>
    %93 = math.tanh %92 : vector<2x32xf32>
    %94 = arith.mulf %90, %78 : vector<2x32xf32>
    %95 = arith.mulf %89, %93 : vector<2x32xf32>
    %96 = arith.addf %94, %95 : vector<2x32xf32>
    %97 = math.tanh %96 : vector<2x32xf32>
    %98 = arith.mulf %91, %97 : vector<2x32xf32>
    %99 = vector.extract_strided_slice %6 {offsets = [10, 0], sizes = [2, 128], strides = [1, 1]} : vector<16x128xf32> to vector<2x128xf32>
    %cst_19 = arith.constant dense<0.000000e+00> : vector<2x128xf32>
    %100 = tpu.matmul %98, %2, %cst_19 {dimension_numbers = #tpu.dot_dimension_numbers<[1], [0], [0], [1], [0, 0, 1, 1], [], []>} : vector<2x32xf32>, vector<32x128xf32>, vector<2x128xf32> -> vector<2x128xf32>
    %101 = arith.addf %99, %100 : vector<2x128xf32>
    %102 = arith.negf %101 : vector<2x128xf32>
    %103 = math.exp %102 : vector<2x128xf32>
    %cst_20 = arith.constant 1.000000e+00 : f32
    %104 = vector.broadcast %cst_20 : f32 to vector<2x128xf32>
    %105 = arith.addf %104, %103 : vector<2x128xf32>
    %106 = arith.divf %104, %105 : vector<2x128xf32>
    %107 = vector.extract_strided_slice %106 {offsets = [0, 0], sizes = [2, 32], strides = [1, 1]} : vector<2x128xf32> to vector<2x32xf32>
    %108 = vector.extract_strided_slice %106 {offsets = [0, 32], sizes = [2, 32], strides = [1, 1]} : vector<2x128xf32> to vector<2x32xf32>
    %109 = vector.extract_strided_slice %106 {offsets = [0, 96], sizes = [2, 32], strides = [1, 1]} : vector<2x128xf32> to vector<2x32xf32>
    %110 = vector.extract_strided_slice %101 {offsets = [0, 64], sizes = [2, 32], strides = [1, 1]} : vector<2x128xf32> to vector<2x32xf32>
    %111 = math.tanh %110 : vector<2x32xf32>
    %112 = arith.mulf %108, %96 : vector<2x32xf32>
    %113 = arith.mulf %107, %111 : vector<2x32xf32>
    %114 = arith.addf %112, %113 : vector<2x32xf32>
    %115 = math.tanh %114 : vector<2x32xf32>
    %116 = arith.mulf %109, %115 : vector<2x32xf32>
    %117 = vector.extract_strided_slice %6 {offsets = [12, 0], sizes = [2, 128], strides = [1, 1]} : vector<16x128xf32> to vector<2x128xf32>
    %cst_21 = arith.constant dense<0.000000e+00> : vector<2x128xf32>
    %118 = tpu.matmul %116, %2, %cst_21 {dimension_numbers = #tpu.dot_dimension_numbers<[1], [0], [0], [1], [0, 0, 1, 1], [], []>} : vector<2x32xf32>, vector<32x128xf32>, vector<2x128xf32> -> vector<2x128xf32>
    %119 = arith.addf %117, %118 : vector<2x128xf32>
    %120 = arith.negf %119 : vector<2x128xf32>
    %121 = math.exp %120 : vector<2x128xf32>
    %cst_22 = arith.constant 1.000000e+00 : f32
    %122 = vector.broadcast %cst_22 : f32 to vector<2x128xf32>
    %123 = arith.addf %122, %121 : vector<2x128xf32>
    %124 = arith.divf %122, %123 : vector<2x128xf32>
    %125 = vector.extract_strided_slice %124 {offsets = [0, 0], sizes = [2, 32], strides = [1, 1]} : vector<2x128xf32> to vector<2x32xf32>
    %126 = vector.extract_strided_slice %124 {offsets = [0, 32], sizes = [2, 32], strides = [1, 1]} : vector<2x128xf32> to vector<2x32xf32>
    %127 = vector.extract_strided_slice %124 {offsets = [0, 96], sizes = [2, 32], strides = [1, 1]} : vector<2x128xf32> to vector<2x32xf32>
    %128 = vector.extract_strided_slice %119 {offsets = [0, 64], sizes = [2, 32], strides = [1, 1]} : vector<2x128xf32> to vector<2x32xf32>
    %129 = math.tanh %128 : vector<2x32xf32>
    %130 = arith.mulf %126, %114 : vector<2x32xf32>
    %131 = arith.mulf %125, %129 : vector<2x32xf32>
    %132 = arith.addf %130, %131 : vector<2x32xf32>
    %133 = math.tanh %132 : vector<2x32xf32>
    %134 = arith.mulf %127, %133 : vector<2x32xf32>
    %135 = vector.extract_strided_slice %6 {offsets = [14, 0], sizes = [2, 128], strides = [1, 1]} : vector<16x128xf32> to vector<2x128xf32>
    %cst_23 = arith.constant dense<0.000000e+00> : vector<2x128xf32>
    %136 = tpu.matmul %134, %2, %cst_23 {dimension_numbers = #tpu.dot_dimension_numbers<[1], [0], [0], [1], [0, 0, 1, 1], [], []>} : vector<2x32xf32>, vector<32x128xf32>, vector<2x128xf32> -> vector<2x128xf32>
    %137 = arith.addf %135, %136 : vector<2x128xf32>
    %138 = arith.negf %137 : vector<2x128xf32>
    %139 = math.exp %138 : vector<2x128xf32>
    %cst_24 = arith.constant 1.000000e+00 : f32
    %140 = vector.broadcast %cst_24 : f32 to vector<2x128xf32>
    %141 = arith.addf %140, %139 : vector<2x128xf32>
    %142 = arith.divf %140, %141 : vector<2x128xf32>
    %143 = vector.extract_strided_slice %142 {offsets = [0, 0], sizes = [2, 32], strides = [1, 1]} : vector<2x128xf32> to vector<2x32xf32>
    %144 = vector.extract_strided_slice %142 {offsets = [0, 32], sizes = [2, 32], strides = [1, 1]} : vector<2x128xf32> to vector<2x32xf32>
    %145 = vector.extract_strided_slice %142 {offsets = [0, 96], sizes = [2, 32], strides = [1, 1]} : vector<2x128xf32> to vector<2x32xf32>
    %146 = vector.extract_strided_slice %137 {offsets = [0, 64], sizes = [2, 32], strides = [1, 1]} : vector<2x128xf32> to vector<2x32xf32>
    %147 = math.tanh %146 : vector<2x32xf32>
    %148 = arith.mulf %144, %132 : vector<2x32xf32>
    %149 = arith.mulf %143, %147 : vector<2x32xf32>
    %150 = arith.addf %148, %149 : vector<2x32xf32>
    %151 = math.tanh %150 : vector<2x32xf32>
    %152 = arith.mulf %145, %151 : vector<2x32xf32>
    %153 = tpu.concatenate %26, %44, %62, %80, %98, %116, %134, %152 in 0 : vector<2x32xf32>, vector<2x32xf32>, vector<2x32xf32>, vector<2x32xf32>, vector<2x32xf32>, vector<2x32xf32>, vector<2x32xf32>, vector<2x32xf32> -> vector<16x32xf32>
    %c0_25 = arith.constant 0 : index
    %c0_26 = arith.constant 0 : index
    %154 = vector.load %arg4[%c0_25, %c0_26] : memref<32x128xf32, #tpu.memory_space<vmem>>, vector<32x128xf32>
    %c0_27 = arith.constant 0 : index
    %c0_28 = arith.constant 0 : index
    %155 = vector.load %arg5[%c0_27, %c0_28] : memref<32x128xf32, #tpu.memory_space<vmem>>, vector<32x128xf32>
    %c0_29 = arith.constant 0 : index
    %c0_30 = arith.constant 0 : index
    %156 = vector.load %arg6[%c0_29, %c0_30] : memref<1x128xf32, #tpu.memory_space<vmem>>, vector<1x128xf32>
    %cst_31 = arith.constant dense<0.000000e+00> : vector<16x128xf32>
    %157 = tpu.matmul %153, %154, %cst_31 {dimension_numbers = #tpu.dot_dimension_numbers<[1], [0], [0], [1], [0, 0, 1, 1], [], []>} : vector<16x32xf32>, vector<32x128xf32>, vector<16x128xf32> -> vector<16x128xf32>
    %158 = vector.broadcast %156 : vector<1x128xf32> to vector<16x128xf32>
    %159 = arith.addf %157, %158 : vector<16x128xf32>
    %cst_32 = arith.constant 0.000000e+00 : f32
    %160 = vector.broadcast %cst_32 : f32 to vector<2x32xf32>
    %cst_33 = arith.constant 0.000000e+00 : f32
    %161 = vector.broadcast %cst_33 : f32 to vector<2x32xf32>
    %162 = vector.extract_strided_slice %159 {offsets = [0, 0], sizes = [2, 128], strides = [1, 1]} : vector<16x128xf32> to vector<2x128xf32>
    %cst_34 = arith.constant dense<0.000000e+00> : vector<2x128xf32>
    %163 = tpu.matmul %160, %155, %cst_34 {dimension_numbers = #tpu.dot_dimension_numbers<[1], [0], [0], [1], [0, 0, 1, 1], [], []>} : vector<2x32xf32>, vector<32x128xf32>, vector<2x128xf32> -> vector<2x128xf32>
    %164 = arith.addf %162, %163 : vector<2x128xf32>
    %165 = arith.negf %164 : vector<2x128xf32>
    %166 = math.exp %165 : vector<2x128xf32>
    %cst_35 = arith.constant 1.000000e+00 : f32
    %167 = vector.broadcast %cst_35 : f32 to vector<2x128xf32>
    %168 = arith.addf %167, %166 : vector<2x128xf32>
    %169 = arith.divf %167, %168 : vector<2x128xf32>
    %170 = vector.extract_strided_slice %169 {offsets = [0, 0], sizes = [2, 32], strides = [1, 1]} : vector<2x128xf32> to vector<2x32xf32>
    %171 = vector.extract_strided_slice %169 {offsets = [0, 32], sizes = [2, 32], strides = [1, 1]} : vector<2x128xf32> to vector<2x32xf32>
    %172 = vector.extract_strided_slice %169 {offsets = [0, 96], sizes = [2, 32], strides = [1, 1]} : vector<2x128xf32> to vector<2x32xf32>
    %173 = vector.extract_strided_slice %164 {offsets = [0, 64], sizes = [2, 32], strides = [1, 1]} : vector<2x128xf32> to vector<2x32xf32>
    %174 = math.tanh %173 : vector<2x32xf32>
    %175 = arith.mulf %171, %161 : vector<2x32xf32>
    %176 = arith.mulf %170, %174 : vector<2x32xf32>
    %177 = arith.addf %175, %176 : vector<2x32xf32>
    %178 = math.tanh %177 : vector<2x32xf32>
    %179 = arith.mulf %172, %178 : vector<2x32xf32>
    %180 = vector.extract_strided_slice %159 {offsets = [2, 0], sizes = [2, 128], strides = [1, 1]} : vector<16x128xf32> to vector<2x128xf32>
    %cst_36 = arith.constant dense<0.000000e+00> : vector<2x128xf32>
    %181 = tpu.matmul %179, %155, %cst_36 {dimension_numbers = #tpu.dot_dimension_numbers<[1], [0], [0], [1], [0, 0, 1, 1], [], []>} : vector<2x32xf32>, vector<32x128xf32>, vector<2x128xf32> -> vector<2x128xf32>
    %182 = arith.addf %180, %181 : vector<2x128xf32>
    %183 = arith.negf %182 : vector<2x128xf32>
    %184 = math.exp %183 : vector<2x128xf32>
    %cst_37 = arith.constant 1.000000e+00 : f32
    %185 = vector.broadcast %cst_37 : f32 to vector<2x128xf32>
    %186 = arith.addf %185, %184 : vector<2x128xf32>
    %187 = arith.divf %185, %186 : vector<2x128xf32>
    %188 = vector.extract_strided_slice %187 {offsets = [0, 0], sizes = [2, 32], strides = [1, 1]} : vector<2x128xf32> to vector<2x32xf32>
    %189 = vector.extract_strided_slice %187 {offsets = [0, 32], sizes = [2, 32], strides = [1, 1]} : vector<2x128xf32> to vector<2x32xf32>
    %190 = vector.extract_strided_slice %187 {offsets = [0, 96], sizes = [2, 32], strides = [1, 1]} : vector<2x128xf32> to vector<2x32xf32>
    %191 = vector.extract_strided_slice %182 {offsets = [0, 64], sizes = [2, 32], strides = [1, 1]} : vector<2x128xf32> to vector<2x32xf32>
    %192 = math.tanh %191 : vector<2x32xf32>
    %193 = arith.mulf %189, %177 : vector<2x32xf32>
    %194 = arith.mulf %188, %192 : vector<2x32xf32>
    %195 = arith.addf %193, %194 : vector<2x32xf32>
    %196 = math.tanh %195 : vector<2x32xf32>
    %197 = arith.mulf %190, %196 : vector<2x32xf32>
    %198 = vector.extract_strided_slice %159 {offsets = [4, 0], sizes = [2, 128], strides = [1, 1]} : vector<16x128xf32> to vector<2x128xf32>
    %cst_38 = arith.constant dense<0.000000e+00> : vector<2x128xf32>
    %199 = tpu.matmul %197, %155, %cst_38 {dimension_numbers = #tpu.dot_dimension_numbers<[1], [0], [0], [1], [0, 0, 1, 1], [], []>} : vector<2x32xf32>, vector<32x128xf32>, vector<2x128xf32> -> vector<2x128xf32>
    %200 = arith.addf %198, %199 : vector<2x128xf32>
    %201 = arith.negf %200 : vector<2x128xf32>
    %202 = math.exp %201 : vector<2x128xf32>
    %cst_39 = arith.constant 1.000000e+00 : f32
    %203 = vector.broadcast %cst_39 : f32 to vector<2x128xf32>
    %204 = arith.addf %203, %202 : vector<2x128xf32>
    %205 = arith.divf %203, %204 : vector<2x128xf32>
    %206 = vector.extract_strided_slice %205 {offsets = [0, 0], sizes = [2, 32], strides = [1, 1]} : vector<2x128xf32> to vector<2x32xf32>
    %207 = vector.extract_strided_slice %205 {offsets = [0, 32], sizes = [2, 32], strides = [1, 1]} : vector<2x128xf32> to vector<2x32xf32>
    %208 = vector.extract_strided_slice %205 {offsets = [0, 96], sizes = [2, 32], strides = [1, 1]} : vector<2x128xf32> to vector<2x32xf32>
    %209 = vector.extract_strided_slice %200 {offsets = [0, 64], sizes = [2, 32], strides = [1, 1]} : vector<2x128xf32> to vector<2x32xf32>
    %210 = math.tanh %209 : vector<2x32xf32>
    %211 = arith.mulf %207, %195 : vector<2x32xf32>
    %212 = arith.mulf %206, %210 : vector<2x32xf32>
    %213 = arith.addf %211, %212 : vector<2x32xf32>
    %214 = math.tanh %213 : vector<2x32xf32>
    %215 = arith.mulf %208, %214 : vector<2x32xf32>
    %216 = vector.extract_strided_slice %159 {offsets = [6, 0], sizes = [2, 128], strides = [1, 1]} : vector<16x128xf32> to vector<2x128xf32>
    %cst_40 = arith.constant dense<0.000000e+00> : vector<2x128xf32>
    %217 = tpu.matmul %215, %155, %cst_40 {dimension_numbers = #tpu.dot_dimension_numbers<[1], [0], [0], [1], [0, 0, 1, 1], [], []>} : vector<2x32xf32>, vector<32x128xf32>, vector<2x128xf32> -> vector<2x128xf32>
    %218 = arith.addf %216, %217 : vector<2x128xf32>
    %219 = arith.negf %218 : vector<2x128xf32>
    %220 = math.exp %219 : vector<2x128xf32>
    %cst_41 = arith.constant 1.000000e+00 : f32
    %221 = vector.broadcast %cst_41 : f32 to vector<2x128xf32>
    %222 = arith.addf %221, %220 : vector<2x128xf32>
    %223 = arith.divf %221, %222 : vector<2x128xf32>
    %224 = vector.extract_strided_slice %223 {offsets = [0, 0], sizes = [2, 32], strides = [1, 1]} : vector<2x128xf32> to vector<2x32xf32>
    %225 = vector.extract_strided_slice %223 {offsets = [0, 32], sizes = [2, 32], strides = [1, 1]} : vector<2x128xf32> to vector<2x32xf32>
    %226 = vector.extract_strided_slice %223 {offsets = [0, 96], sizes = [2, 32], strides = [1, 1]} : vector<2x128xf32> to vector<2x32xf32>
    %227 = vector.extract_strided_slice %218 {offsets = [0, 64], sizes = [2, 32], strides = [1, 1]} : vector<2x128xf32> to vector<2x32xf32>
    %228 = math.tanh %227 : vector<2x32xf32>
    %229 = arith.mulf %225, %213 : vector<2x32xf32>
    %230 = arith.mulf %224, %228 : vector<2x32xf32>
    %231 = arith.addf %229, %230 : vector<2x32xf32>
    %232 = math.tanh %231 : vector<2x32xf32>
    %233 = arith.mulf %226, %232 : vector<2x32xf32>
    %234 = vector.extract_strided_slice %159 {offsets = [8, 0], sizes = [2, 128], strides = [1, 1]} : vector<16x128xf32> to vector<2x128xf32>
    %cst_42 = arith.constant dense<0.000000e+00> : vector<2x128xf32>
    %235 = tpu.matmul %233, %155, %cst_42 {dimension_numbers = #tpu.dot_dimension_numbers<[1], [0], [0], [1], [0, 0, 1, 1], [], []>} : vector<2x32xf32>, vector<32x128xf32>, vector<2x128xf32> -> vector<2x128xf32>
    %236 = arith.addf %234, %235 : vector<2x128xf32>
    %237 = arith.negf %236 : vector<2x128xf32>
    %238 = math.exp %237 : vector<2x128xf32>
    %cst_43 = arith.constant 1.000000e+00 : f32
    %239 = vector.broadcast %cst_43 : f32 to vector<2x128xf32>
    %240 = arith.addf %239, %238 : vector<2x128xf32>
    %241 = arith.divf %239, %240 : vector<2x128xf32>
    %242 = vector.extract_strided_slice %241 {offsets = [0, 0], sizes = [2, 32], strides = [1, 1]} : vector<2x128xf32> to vector<2x32xf32>
    %243 = vector.extract_strided_slice %241 {offsets = [0, 32], sizes = [2, 32], strides = [1, 1]} : vector<2x128xf32> to vector<2x32xf32>
    %244 = vector.extract_strided_slice %241 {offsets = [0, 96], sizes = [2, 32], strides = [1, 1]} : vector<2x128xf32> to vector<2x32xf32>
    %245 = vector.extract_strided_slice %236 {offsets = [0, 64], sizes = [2, 32], strides = [1, 1]} : vector<2x128xf32> to vector<2x32xf32>
    %246 = math.tanh %245 : vector<2x32xf32>
    %247 = arith.mulf %243, %231 : vector<2x32xf32>
    %248 = arith.mulf %242, %246 : vector<2x32xf32>
    %249 = arith.addf %247, %248 : vector<2x32xf32>
    %250 = math.tanh %249 : vector<2x32xf32>
    %251 = arith.mulf %244, %250 : vector<2x32xf32>
    %252 = vector.extract_strided_slice %159 {offsets = [10, 0], sizes = [2, 128], strides = [1, 1]} : vector<16x128xf32> to vector<2x128xf32>
    %cst_44 = arith.constant dense<0.000000e+00> : vector<2x128xf32>
    %253 = tpu.matmul %251, %155, %cst_44 {dimension_numbers = #tpu.dot_dimension_numbers<[1], [0], [0], [1], [0, 0, 1, 1], [], []>} : vector<2x32xf32>, vector<32x128xf32>, vector<2x128xf32> -> vector<2x128xf32>
    %254 = arith.addf %252, %253 : vector<2x128xf32>
    %255 = arith.negf %254 : vector<2x128xf32>
    %256 = math.exp %255 : vector<2x128xf32>
    %cst_45 = arith.constant 1.000000e+00 : f32
    %257 = vector.broadcast %cst_45 : f32 to vector<2x128xf32>
    %258 = arith.addf %257, %256 : vector<2x128xf32>
    %259 = arith.divf %257, %258 : vector<2x128xf32>
    %260 = vector.extract_strided_slice %259 {offsets = [0, 0], sizes = [2, 32], strides = [1, 1]} : vector<2x128xf32> to vector<2x32xf32>
    %261 = vector.extract_strided_slice %259 {offsets = [0, 32], sizes = [2, 32], strides = [1, 1]} : vector<2x128xf32> to vector<2x32xf32>
    %262 = vector.extract_strided_slice %259 {offsets = [0, 96], sizes = [2, 32], strides = [1, 1]} : vector<2x128xf32> to vector<2x32xf32>
    %263 = vector.extract_strided_slice %254 {offsets = [0, 64], sizes = [2, 32], strides = [1, 1]} : vector<2x128xf32> to vector<2x32xf32>
    %264 = math.tanh %263 : vector<2x32xf32>
    %265 = arith.mulf %261, %249 : vector<2x32xf32>
    %266 = arith.mulf %260, %264 : vector<2x32xf32>
    %267 = arith.addf %265, %266 : vector<2x32xf32>
    %268 = math.tanh %267 : vector<2x32xf32>
    %269 = arith.mulf %262, %268 : vector<2x32xf32>
    %270 = vector.extract_strided_slice %159 {offsets = [12, 0], sizes = [2, 128], strides = [1, 1]} : vector<16x128xf32> to vector<2x128xf32>
    %cst_46 = arith.constant dense<0.000000e+00> : vector<2x128xf32>
    %271 = tpu.matmul %269, %155, %cst_46 {dimension_numbers = #tpu.dot_dimension_numbers<[1], [0], [0], [1], [0, 0, 1, 1], [], []>} : vector<2x32xf32>, vector<32x128xf32>, vector<2x128xf32> -> vector<2x128xf32>
    %272 = arith.addf %270, %271 : vector<2x128xf32>
    %273 = arith.negf %272 : vector<2x128xf32>
    %274 = math.exp %273 : vector<2x128xf32>
    %cst_47 = arith.constant 1.000000e+00 : f32
    %275 = vector.broadcast %cst_47 : f32 to vector<2x128xf32>
    %276 = arith.addf %275, %274 : vector<2x128xf32>
    %277 = arith.divf %275, %276 : vector<2x128xf32>
    %278 = vector.extract_strided_slice %277 {offsets = [0, 0], sizes = [2, 32], strides = [1, 1]} : vector<2x128xf32> to vector<2x32xf32>
    %279 = vector.extract_strided_slice %277 {offsets = [0, 32], sizes = [2, 32], strides = [1, 1]} : vector<2x128xf32> to vector<2x32xf32>
    %280 = vector.extract_strided_slice %277 {offsets = [0, 96], sizes = [2, 32], strides = [1, 1]} : vector<2x128xf32> to vector<2x32xf32>
    %281 = vector.extract_strided_slice %272 {offsets = [0, 64], sizes = [2, 32], strides = [1, 1]} : vector<2x128xf32> to vector<2x32xf32>
    %282 = math.tanh %281 : vector<2x32xf32>
    %283 = arith.mulf %279, %267 : vector<2x32xf32>
    %284 = arith.mulf %278, %282 : vector<2x32xf32>
    %285 = arith.addf %283, %284 : vector<2x32xf32>
    %286 = math.tanh %285 : vector<2x32xf32>
    %287 = arith.mulf %280, %286 : vector<2x32xf32>
    %288 = vector.extract_strided_slice %159 {offsets = [14, 0], sizes = [2, 128], strides = [1, 1]} : vector<16x128xf32> to vector<2x128xf32>
    %cst_48 = arith.constant dense<0.000000e+00> : vector<2x128xf32>
    %289 = tpu.matmul %287, %155, %cst_48 {dimension_numbers = #tpu.dot_dimension_numbers<[1], [0], [0], [1], [0, 0, 1, 1], [], []>} : vector<2x32xf32>, vector<32x128xf32>, vector<2x128xf32> -> vector<2x128xf32>
    %290 = arith.addf %288, %289 : vector<2x128xf32>
    %291 = arith.negf %290 : vector<2x128xf32>
    %292 = math.exp %291 : vector<2x128xf32>
    %cst_49 = arith.constant 1.000000e+00 : f32
    %293 = vector.broadcast %cst_49 : f32 to vector<2x128xf32>
    %294 = arith.addf %293, %292 : vector<2x128xf32>
    %295 = arith.divf %293, %294 : vector<2x128xf32>
    %296 = vector.extract_strided_slice %295 {offsets = [0, 0], sizes = [2, 32], strides = [1, 1]} : vector<2x128xf32> to vector<2x32xf32>
    %297 = vector.extract_strided_slice %295 {offsets = [0, 32], sizes = [2, 32], strides = [1, 1]} : vector<2x128xf32> to vector<2x32xf32>
    %298 = vector.extract_strided_slice %295 {offsets = [0, 96], sizes = [2, 32], strides = [1, 1]} : vector<2x128xf32> to vector<2x32xf32>
    %299 = vector.extract_strided_slice %290 {offsets = [0, 64], sizes = [2, 32], strides = [1, 1]} : vector<2x128xf32> to vector<2x32xf32>
    %300 = math.tanh %299 : vector<2x32xf32>
    %301 = arith.mulf %297, %285 : vector<2x32xf32>
    %302 = arith.mulf %296, %300 : vector<2x32xf32>
    %303 = arith.addf %301, %302 : vector<2x32xf32>
    %304 = math.tanh %303 : vector<2x32xf32>
    %305 = arith.mulf %298, %304 : vector<2x32xf32>
    %c0_50 = arith.constant 0 : index
    %c0_51 = arith.constant 0 : index
    %306 = vector.load %arg7[%c0_50, %c0_51] : memref<32x256xf32, #tpu.memory_space<vmem>>, vector<32x256xf32>
    %cst_52 = arith.constant dense<0.000000e+00> : vector<2x256xf32>
    %307 = tpu.matmul %305, %306, %cst_52 {dimension_numbers = #tpu.dot_dimension_numbers<[1], [0], [0], [1], [0, 0, 1, 1], [], []>} : vector<2x32xf32>, vector<32x256xf32>, vector<2x256xf32> -> vector<2x256xf32>
    %c0_53 = arith.constant 0 : index
    %c0_54 = arith.constant 0 : index
    %308 = vector.load %arg8[%c0_53, %c0_54] : memref<1x256xf32, #tpu.memory_space<vmem>>, vector<1x256xf32>
    %309 = vector.broadcast %308 : vector<1x256xf32> to vector<2x256xf32>
    %310 = arith.addf %307, %309 : vector<2x256xf32>
    %cst_55 = arith.constant 0.000000e+00 : f32
    %311 = vector.broadcast %cst_55 : f32 to vector<2x256xf32>
    %312 = arith.maximumf %310, %311 : vector<2x256xf32>
    %c0_56 = arith.constant 0 : index
    %c0_57 = arith.constant 0 : index
    %313 = vector.load %arg9[%c0_56, %c0_57] : memref<256x128xf32, #tpu.memory_space<vmem>>, vector<256x128xf32>
    %cst_58 = arith.constant dense<0.000000e+00> : vector<2x128xf32>
    %314 = tpu.matmul %312, %313, %cst_58 {dimension_numbers = #tpu.dot_dimension_numbers<[1], [0], [0], [1], [0, 0, 1, 1], [], []>} : vector<2x256xf32>, vector<256x128xf32>, vector<2x128xf32> -> vector<2x128xf32>
    %c0_59 = arith.constant 0 : index
    %c0_60 = arith.constant 0 : index
    %315 = vector.load %arg10[%c0_59, %c0_60] : memref<1x128xf32, #tpu.memory_space<vmem>>, vector<1x128xf32>
    %316 = vector.broadcast %315 : vector<1x128xf32> to vector<2x128xf32>
    %317 = arith.addf %314, %316 : vector<2x128xf32>
    %cst_61 = arith.constant 0.000000e+00 : f32
    %318 = vector.broadcast %cst_61 : f32 to vector<2x128xf32>
    %319 = arith.maximumf %317, %318 : vector<2x128xf32>
    %c0_62 = arith.constant 0 : index
    %c0_63 = arith.constant 0 : index
    %320 = vector.load %arg11[%c0_62, %c0_63] : memref<128x64xf32, #tpu.memory_space<vmem>>, vector<128x64xf32>
    %cst_64 = arith.constant dense<0.000000e+00> : vector<2x64xf32>
    %321 = tpu.matmul %319, %320, %cst_64 {dimension_numbers = #tpu.dot_dimension_numbers<[1], [0], [0], [1], [0, 0, 1, 1], [], []>} : vector<2x128xf32>, vector<128x64xf32>, vector<2x64xf32> -> vector<2x64xf32>
    %c0_65 = arith.constant 0 : index
    %c0_66 = arith.constant 0 : index
    %322 = vector.load %arg12[%c0_65, %c0_66] : memref<1x64xf32, #tpu.memory_space<vmem>>, vector<1x64xf32>
    %323 = vector.broadcast %322 : vector<1x64xf32> to vector<2x64xf32>
    %324 = arith.addf %321, %323 : vector<2x64xf32>
    %cst_67 = arith.constant 0.000000e+00 : f32
    %325 = vector.broadcast %cst_67 : f32 to vector<2x64xf32>
    %326 = arith.maximumf %324, %325 : vector<2x64xf32>
    %c0_68 = arith.constant 0 : index
    %c0_69 = arith.constant 0 : index
    %327 = vector.load %arg13[%c0_68, %c0_69] : memref<64x1xf32, #tpu.memory_space<vmem>>, vector<64x1xf32>
    %cst_70 = arith.constant dense<0.000000e+00> : vector<2x1xf32>
    %328 = tpu.matmul %326, %327, %cst_70 {dimension_numbers = #tpu.dot_dimension_numbers<[1], [0], [0], [1], [0, 0, 1, 1], [], []>} : vector<2x64xf32>, vector<64x1xf32>, vector<2x1xf32> -> vector<2x1xf32>
    %c0_71 = arith.constant 0 : index
    %c0_72 = arith.constant 0 : index
    %329 = vector.load %arg14[%c0_71, %c0_72] : memref<1x1xf32, #tpu.memory_space<vmem>>, vector<1x1xf32>
    %330 = vector.broadcast %329 : vector<1x1xf32> to vector<2x1xf32>
    %331 = arith.addf %328, %330 : vector<2x1xf32>
    %332 = arith.negf %331 : vector<2x1xf32>
    %333 = math.exp %332 : vector<2x1xf32>
    %cst_73 = arith.constant 1.000000e+00 : f32
    %334 = vector.broadcast %cst_73 : f32 to vector<2x1xf32>
    %335 = arith.addf %334, %333 : vector<2x1xf32>
    %336 = arith.divf %334, %335 : vector<2x1xf32>
    %c0_74 = arith.constant 0 : index
    %c0_75 = arith.constant 0 : index
    %337 = vector.load %arg15[%c0_74, %c0_75] : memref<2x1xf32, #tpu.memory_space<vmem>>, vector<2x1xf32>
    tpu.vector_store %arg15[%c0_74, %c0_75], %336 {strides = array<i32>} : memref<2x1xf32, #tpu.memory_space<vmem>>, vector<2x1xf32>,
    return
  }
}

</mosaic_0001>

<bundles_post_ra>
// kernel: _lambda_.1
= control target key start
LH: loop header
LB: loop body
LE: loop exit
PB: predicated region body
PF: predicated region fallthrough
CT: control target
= control target key end

     0   :  { %s3676_s0 = inlined_call_operand.vmem [shape: f32[16,8], index: 0, kind: input, shape index: {}]   ;;  %s3677_s1 = inlined_call_operand.vmem [shape: f32[8,128], index: 1, kind: input, shape index: {}]   ;;  %s3678_s2 = inlined_call_operand.hbm [shape: f32[32,128], index: 2, kind: input, shape index: {}]   ;;  %s3679_s3 = inlined_call_operand.hbm [shape: f32[1,128], index: 3, kind: input, shape index: {}]   ;;  %s3680_s4 = inlined_call_operand.hbm [shape: f32[32,128], index: 4, kind: input, shape index: {}]   ;;  %s3681_s5 = inlined_call_operand.vmem [shape: f32[32,128], index: 5, kind: input, shape index: {}]   ;;  %s3682_s6 = inlined_call_operand.vmem [shape: f32[1,128], index: 6, kind: input, shape index: {}]   ;;  %s3683_s7 = inlined_call_operand.hbm [shape: f32[32,256], index: 7, kind: input, shape index: {}]   ;;  %s3684_s8 = inlined_call_operand.vmem [shape: f32[1,256], index: 8, kind: input, shape index: {}]   ;;  %s3685_s9 = inlined_call_operand.hbm [shape: f32[256,128], index: 9, kind: input, shape index: {}]   ;;  %s3686_s10 = inlined_call_operand.vmem [shape: f32[1,128], index: 10, kind: input, shape index: {}]   ;;  %s3687_s11 = inlined_call_operand.hbm [shape: f32[128,64], index: 11, kind: input, shape index: {}]   ;;  %s3688_s12 = inlined_call_operand.vmem [shape: f32[1,64], index: 12, kind: input, shape index: {}]   ;;  %s3689_s13 = inlined_call_operand.hbm [shape: f32[64,1], index: 13, kind: input, shape index: {}]   ;;  %s3690_s14 = inlined_call_operand.<no memory space> [shape: f32[1,1], index: 14, kind: input, shape index: {}]   ;;  %s3691_s15 = inlined_call_operand.vmem [shape: f32[2,1], index: 15, kind: output, shape index: {}]  }
   0x1   :  { %v20_v0 = vstv %s3690_s14 }
   0x2   :  { %21 = vst [vmem:[#allocation2] sm:$0x1] %v20_v0 }
   0x3   :  { %22 = vsyncpa [#allocation4], 0 }
   0x4   :  { %23 = vsyncpa [#allocation6], 0 }
   0x5   :  { %24 = vsyncpa [#allocation9], 0 }
   0x6   :  { %25 = vsyncpa [#allocation12], 0  ;;  %s3173_s20 = smov [#allocation5]   ;;  %s3174_s22 = smov [#allocation8]  }
   0x7   :  { %s48_s21 = sshll.u32 %s3173_s20, 4  ;;  %s73_s23 = sshll.u32 %s3174_s22, 4  ;;  %s49_s21 = int_to_ptr.vmem [resolvable:$true] %s48_s21  ;;  %s74_s23 = int_to_ptr.vmem [resolvable:$true] %s73_s23 }
   0x8   :  { %s3033_s24 = scalar_lea.vmem %s49_s21, 16  ;;  %s3037_s25 = scalar_lea.vmem %s49_s21, 32 }
   0x9   :  { %p3034_p0 = scmp.ne.s32.totalorder %s49_s21, %s3033_s24  ;;  %p3038_p1 = scmp.lt.s32.totalorder %s49_s21, %s49_s21 }
   0xa   :  { %p3039_p2 = scmp.lt.s32.totalorder %s3037_s25, %s3033_s24 }
   0xc   :  { %p3040_p3 = por %p3039_p2, %p3038_p1 }
   0xe   :  { %p3041_p4 = pnand %p3040_p3, %p3034_p0 }
  0x10   :  { %3044 = shalt.err (!%p3041_p4)
}
  0x11   :  { %51 = dma.hbm_to_vmem [thread:$0]  %s3679_s3, 16, %s49_s21, [#allocation6]  }
  0x12   :  { %s3053_s27 = scalar_lea.vmem %s74_s23, 1024  ;;  %p3058_p6 = scmp.lt.s32.totalorder %s74_s23, %s74_s23 }
  0x13   :  { %p3054_p5 = scmp.ne.s32.totalorder %s74_s23, %s3053_s27  ;;  %p3059_p7 = scmp.lt.s32.totalorder %s3053_s27, %s3053_s27 }
  0x15   :  { %p3060_p8 = por %p3059_p7, %p3058_p6 }
  0x17   :  { %p3061_p9 = pnand %p3060_p8, %p3054_p5 }
  0x19   :  { %3064 = shalt.err (!%p3061_p9)
}
  0x1a   :  { %s3175_s28 = smov 256   ;;  %s3176_s29 = smov 16  }
  0x1b   :  { %79 = dma.hbm_to_vmem [thread:$0]  %s3683_s7, 1024, %s74_s23, [#allocation9], %s3175_s28, %s3175_s28, %s3176_s29  }
  0x1c   :  { %s3177_s17 = smov [#allocation11]   ;;  %s3178_s19 = smov [#allocation3]  }
  0x1d   :  { %s101_s18 = sshll.u32 %s3177_s17, 4  ;;  %s35_s20 = sshll.u32 %s3178_s19, 4  ;;  %s102_s18 = int_to_ptr.vmem [resolvable:$true] %s101_s18  ;;  %s36_s20 = int_to_ptr.vmem [resolvable:$true] %s35_s20 }
  0x1e   :  { %s3073_s3 = scalar_lea.vmem %s102_s18, 2048  ;;  %p3078_p11 = scmp.lt.s32.totalorder %s102_s18, %s102_s18 }
  0x1f   :  { %p3074_p10 = scmp.ne.s32.totalorder %s102_s18, %s3073_s3  ;;  %p3079_p12 = scmp.lt.s32.totalorder %s3073_s3, %s3073_s3 }
  0x21   :  { %p3080_p13 = por %p3079_p12, %p3078_p11 }
  0x23   :  { %p3081_p0 = pnand %p3080_p13, %p3074_p10 }
  0x25   :  { %3084 = shalt.err (!%p3081_p0)
}
  0x26   :  { %s3179_s21 = smov 128   ;;  %s3180_s22 = smov 8  }
  0x27   :  { %107 = dma.hbm_to_vmem [thread:$0]  %s3687_s11, 2048, %s102_s18, [#allocation12], %s3179_s21, %s3179_s21, %s3180_s22  }
  0x28   :  { %s3093_s23 = scalar_lea.vmem %s36_s20, 512  ;;  %p3098_p2 = scmp.lt.s32.totalorder %s36_s20, %s36_s20 }
  0x29   :  { %p3094_p1 = scmp.ne.s32.totalorder %s36_s20, %s3093_s23  ;;  %p3099_p3 = scmp.lt.s32.totalorder %s3093_s23, %s3093_s23 }
  0x2b   :  { %p3100_p4 = por %p3099_p3, %p3098_p2 }
  0x2d   :  { %p3101_p5 = pnand %p3100_p4, %p3094_p1 }
  0x2f   :  { %3104 = shalt.err (!%p3101_p5)
}
  0x30   :  { %41 = dma.hbm_to_vmem [thread:$0]  %s3678_s2, 512, %s36_s20, [#allocation4], %s3179_s21, %s3179_s21, %s3180_s22  }
  0x31   :  { %s3181_s26 = smov [#allocation7]   ;;  %s3182_s28 = smov [#allocation10]  }
  0x32   :  { %s57_s27 = sshll.u32 %s3181_s26, 4  ;;  %s87_s29 = sshll.u32 %s3182_s28, 4  ;;  %s58_s27 = int_to_ptr.vmem [resolvable:$true] %s57_s27  ;;  %s88_s29 = int_to_ptr.vmem [resolvable:$true] %s87_s29 }
  0x33   :  { %s3113_s11 = scalar_lea.vmem %s58_s27, 512  ;;  %p3118_p7 = scmp.lt.s32.totalorder %s58_s27, %s58_s27 }
  0x34   :  { %p3114_p6 = scmp.ne.s32.totalorder %s58_s27, %s3113_s11  ;;  %p3119_p8 = scmp.lt.s32.totalorder %s3113_s11, %s3113_s11 }
  0x36   :  { %p3120_p9 = por %p3119_p8, %p3118_p7 }
  0x38   :  { %p3121_p10 = pnand %p3120_p9, %p3114_p6 }
  0x3a   :  { %3124 = shalt.err (!%p3121_p10)
}
  0x3b   :  { %63 = dma.hbm_to_vmem [thread:$0]  %s3680_s4, 512, %s58_s27, [#allocation6], %s3179_s21, %s3179_s21, %s3180_s22  }
  0x3c   :  { %s3133_s2 = scalar_lea.vmem %s88_s29, 4096  ;;  %p3138_p12 = scmp.lt.s32.totalorder %s88_s29, %s88_s29 }
  0x3d   :  { %p3134_p11 = scmp.ne.s32.totalorder %s88_s29, %s3133_s2  ;;  %p3139_p13 = scmp.lt.s32.totalorder %s3133_s2, %s3133_s2 }
  0x3f   :  { %p3140_p0 = por %p3139_p13, %p3138_p12 }
  0x41   :  { %p3141_p1 = pnand %p3140_p0, %p3134_p11 }
  0x43   :  { %3144 = shalt.err (!%p3141_p1)
}
  0x44   :  { %93 = dma.hbm_to_vmem [thread:$0]  %s3685_s9, 4096, %s88_s29, [#allocation9], %s3179_s21, %s3179_s21, %s3180_s22  }
  0x45   :  { %s3183_s19 = smov [#allocation13]  }
  0x46   :  { %s115_s20 = sshll.u32 %s3183_s19, 4  ;;  %s116_s20 = int_to_ptr.vmem [resolvable:$true] %s115_s20 }
  0x47   :  { %s3153_s3 = scalar_lea.vmem %s116_s20, 1024  ;;  %p3158_p3 = scmp.lt.s32.totalorder %s116_s20, %s116_s20 }
  0x48   :  { %p3154_p2 = scmp.ne.s32.totalorder %s116_s20, %s3153_s3  ;;  %p3159_p4 = scmp.lt.s32.totalorder %s3153_s3, %s3153_s3 }
  0x4a   :  { %p3160_p5 = por %p3159_p4, %p3158_p3 }
  0x4c   :  { %p3161_p6 = pnand %p3160_p5, %p3154_p2 }
  0x4e   :  { %3164 = shalt.err (!%p3161_p6)
}
  0x4f   :  { %121 = dma.hbm_to_vmem [thread:$0]  %s3689_s13, 1024, %s116_s20, [#allocation12], %s3179_s21, %s3179_s21, %s3180_s22  }
  0x50   :  { %3165 = dma.done.wait [#allocation4], 512  }
  0x51   :  { %3166 = vsyncadd [#allocation4], 4294966784 }
  0x52   :  { %3167 = dma.done.wait [#allocation6], 528  }
  0x53   :  { %3168 = vsyncadd [#allocation6], 4294966768 }
  0x54   :  { %3169 = dma.done.wait [#allocation9], 5120  }
  0x55   :  { %3170 = vsyncadd [#allocation9], 4294962176 }
  0x56   :  { %3171 = dma.done.wait [#allocation12], 3072  }
  0x57   :  { %3172 = vsyncadd [#allocation12], 4294964224  ;;  %v3184_v1 = vmov 0.0   ;;  %vm3185_vm0 = vmmov 0   ;;  %vm159_vm1 = vcmask 64512   ;;  %v147_v2 = vld [vmem:[%s3677_s1] sm:$0xff] }
  0x58   :  { %2659 = vmatprep.subr.mxu1 %v3184_v1  ;;  %2667 = vmatprep.mubr.msk.f32.mxu1 %vm3185_vm0, %v3184_v1  ;;  %v145_v3 = vld [vmem:[%s3676_s0] sm:$0xff]  ;;  %v146_v4 = vld [vmem:[%s3676_s0 + $0x8] sm:$0xff]  ;;  %v3323_v6 = vld [vmem:[#allocation3 + $0x10] sm:$0xff]  ;;  %s3186_s0 = smov 64   ;;  %s3187_s1 = smov 32   ;;  %vm241_vm2 = vcmask 261120  }
  0x59   :  { %2632 = vmatprep.subr.mxu0 %v147_v2  ;;  %2634 = vmatprep.mubr.msk.f32.mxu0 %vm159_vm1, %v145_v3  ;;  %v3319_v5 = vld [vmem:[#allocation3 + $0x18] sm:$0xff]  ;;  %v3329_v7 = vld [vmem:[#allocation3 + $0x8] sm:$0xff]  ;;  %v3335_v8 = vld [vmem:[#allocation3] sm:$0xff]  ;;  %vm1084_vm3 = vcmask 1041408   ;;  %vm1086_vm4 = vcmask 1043456   ;;  %vm1088_vm5 = vcmask 1045504  }
  0x5a   :  { %2633 = vmatpush3.msra.mxu0 %v147_v2  ;;  %2660 = vmatpush3.msra.mxu1 %v3319_v5  ;;  %v2440_v9 = vld [vmem:[#allocation5] ss:$0 sm:$0xff]  ;;  %vm2350_vm6 = vcmask 523264   ;;  %vm2430_vm7 = vcmask 1024  }
  0x5b   :  { %2635 = vmatmul.mubr.msk.f32.vlgmr.msra.gmra.mxu0 %vm159_vm1, %v146_v4  ;;  %2637 = vmatprep.subr.mxu0 %v3184_v1 }
  0x5c   :  { %2638 = vmatpush3.msra.mxu0 %v3319_v5  ;;  %2645 = vmatprep.mubr.msk.f32.mxu0 %vm3185_vm0, %v3184_v1 }
  0x5d   :  { %2639 = vmatprep.subr.mxu0 %v3184_v1  ;;  %2661 = vmatprep.subr.mxu1 %v3184_v1 }
  0x5e   :  { %2640 = vmatpush3.msra.mxu0 %v3323_v6  ;;  %2662 = vmatpush3.msra.mxu1 %v3323_v6 }
  0x5f   :  { %2641 = vmatprep.subr.mxu0 %v3184_v1  ;;  %2663 = vmatprep.subr.mxu1 %v3184_v1 }
  0x60   :  { %2642 = vmatpush3.msra.mxu0 %v3329_v7  ;;  %2664 = vmatpush3.msra.mxu1 %v3329_v7 }
  0x61   :  { %2643 = vmatprep.subr.mxu0 %v3184_v1  ;;  %2665 = vmatprep.subr.mxu1 %v3184_v1 }
  0x62   :  { %2644 = vmatpush3.msra.mxu0 %v3335_v8  ;;  %2666 = vmatpush3.msra.mxu1 %v3335_v8 }
  0x63   :  { %2646 = vmatmul.mubr.f32.vlgmr.msra.gmra.mxu0 %v3184_v1  ;;  %2648 = vmatprep.subr.mxu0 %v3184_v1 }
  0x64   :  { %2649 = vmatpush3.msra.mxu0 %v3319_v5  ;;  %2656 = vmatprep.mubr.msk.f32.mxu0 %vm3185_vm0, %v3184_v1 }
  0x65   :  { %2650 = vmatprep.subr.mxu0 %v3184_v1  ;;  %2681 = vmatprep.subr.mxu1 %v3184_v1 }
  0x66   :  { %2651 = vmatpush3.msra.mxu0 %v3323_v6 }
  0x67   :  { %2652 = vmatprep.subr.mxu0 %v3184_v1 }
  0x68   :  { %2653 = vmatpush3.msra.mxu0 %v3329_v7 }
  0x69   :  { %2654 = vmatprep.subr.mxu0 %v3184_v1 }
  0x6a   :  { %2655 = vmatpush3.msra.mxu0 %v3335_v8 }
  0x6b   :  { %2670 = vmatprep.subr.mxu0 %v3184_v1 }
 0x11b   :  { %v2636_v10 = vpop.f32.mrf.mxu0 }
 0x11c   :  { %v3357_v11 = vadd.f32 %v2636_v10, %v2440_v9 }
 0x11d   :  { %v232_v12 = vpop.f32.mrf.mxu0 }
 0x11e   :  { %v3359_v13 = vadd.f32 %v2440_v9, %v232_v12 }
 0x123   :  { %v311_v14 = vpop.f32.mrf.mxu0 }
 0x124   :  { %v315_v15 = vadd.f32 %v311_v14, %v3359_v13 }
 0x125   :  { %v2647_v16 = vpop.f32.mrf.mxu0 }
 0x126   :  { %2893 = vtanh.f32 %v315_v15  ;;  %v2443_v18 = vmul.f32 -1.442695, %v315_v15 }
 0x128   :  { %2895 = vpow2.f32 %v2443_v18 }
 0x133   :  { %v2894_v17 = vpop.eup %2893 }
 0x134   :  { %325 = vrot.lane.b32.xlu0 %v2894_v17, %s3186_s0 }
 0x135   :  { %v2896_v19 = vpop.eup %2895 }
 0x136   :  { %v319_v20 = vadd.f32 1.0, %v2896_v19 }
 0x138   :  { %2897 = vrcp.f32 %v319_v20 }
 0x145   :  { %v2898_v21 = vpop.eup %2897 }
 0x146   :  { %v323_v24 = vmul.f32 0.0, %v2898_v21 }
 0x1a6   :  { %v326_v22 = vpop.permute.xlu0 %325 }
 0x1a7   :  { %v328_v23 = vmul.f32 %v2898_v21, %v326_v22 }
 0x1a9   :  { %330 = vrot.lane.b32.xlu0 %v328_v23, %s3187_s1 }
 0x21b   :  { %v331_v25 = vpop.permute.xlu0 %330 }
 0x21c   :  { %v333_v26 = vadd.f32 %v331_v25, %v323_v24 }
 0x21e   :  { %2899 = vtanh.f32 %v333_v26  ;;  %v427_v42 = vrot.slane %v333_v26, 6 }
 0x22b   :  { %v2900_v27 = vpop.eup %2899 }
 0x22c   :  { %336 = vrot.lane.b32.xlu1 %v2900_v27, %s3186_s0 }
 0x29e   :  { %v337_v28 = vpop.permute.xlu1 %336 }
 0x29f   :  { %v3365_v29 = vmul.f32 %v2898_v21, %v337_v28 }
 0x2a1   :  { %341 = vrot.lane.b32.xlu1 %v3365_v29, %s3187_s1 }
 0x313   :  { %v342_v30 = vpop.permute.xlu1 %341 }
 0x314   :  { %2657 = vmatmul.mubr.msk.f32.vlgmr.msra.gmra.mxu0 %vm241_vm2, %v342_v30 }
 0x315   :  { %2671 = vmatpush3.msra.mxu0 %v3319_v5  ;;  %2678 = vmatprep.mubr.msk.f32.mxu0 %vm3185_vm0, %v3184_v1 }
 0x316   :  { %2672 = vmatprep.subr.mxu0 %v3184_v1 }
 0x317   :  { %2673 = vmatpush3.msra.mxu0 %v3323_v6 }
 0x318   :  { %2674 = vmatprep.subr.mxu0 %v3184_v1 }
 0x319   :  { %2675 = vmatpush3.msra.mxu0 %v3329_v7 }
 0x31a   :  { %2676 = vmatprep.subr.mxu0 %v3184_v1 }
 0x31b   :  { %2677 = vmatpush3.msra.mxu0 %v3335_v8 }
 0x31c   :  { %2692 = vmatprep.subr.mxu0 %v3184_v1 }
 0x3d4   :  { %v411_v31 = vpop.f32.mrf.mxu0 }
 0x3d5   :  { %v416_v32 = vrot.slane %v411_v31, 6 }
 0x3d6   :  { %v2658_v33 = vpop.f32.mrf.mxu0 }
 0x3d7   :  { %v418_v34 = vadd.f32 %v416_v32, %v3359_v13 }
 0x3d9   :  { %2901 = vtanh.f32 %v418_v34  ;;  %v2445_v36 = vmul.f32 -1.442695, %v418_v34 }
 0x3db   :  { %2903 = vpow2.f32 %v2445_v36 }
 0x3e6   :  { %v2902_v35 = vpop.eup %2901 }
 0x3e7   :  { %431 = vrot.lane.b32.xlu0 %v2902_v35, %s3186_s0 }
 0x3e8   :  { %v2904_v37 = vpop.eup %2903 }
 0x3e9   :  { %v422_v38 = vadd.f32 1.0, %v2904_v37 }
 0x3eb   :  { %2905 = vrcp.f32 %v422_v38 }
 0x3f8   :  { %v2906_v39 = vpop.eup %2905 }
 0x3f9   :  { %v429_v43 = vmul.f32 %v2906_v39, %v427_v42 }
 0x459   :  { %v432_v40 = vpop.permute.xlu0 %431 }
 0x45a   :  { %v434_v41 = vmul.f32 %v2906_v39, %v432_v40 }
 0x45c   :  { %436 = vrot.lane.b32.xlu1 %v434_v41, %s3187_s1 }
 0x4ce   :  { %v437_v44 = vpop.permute.xlu1 %436 }
 0x4cf   :  { %v439_v45 = vadd.f32 %v437_v44, %v429_v43 }
 0x4d1   :  { %2907 = vtanh.f32 %v439_v45  ;;  %v534_v62 = vrot.slane %v439_v45, 6 }
 0x4de   :  { %v2908_v46 = vpop.eup %2907 }
 0x4df   :  { %442 = vrot.lane.b32.xlu0 %v2908_v46, %s3186_s0 }
 0x551   :  { %v443_v47 = vpop.permute.xlu0 %442 }
 0x552   :  { %v445_v48 = vmul.f32 %v2906_v39, %v443_v47 }
 0x554   :  { %v447_v49 = vrot.slane %v445_v48, 2  ;;  %v1085_v10 = vsel %vm1084_vm3, %v3365_v29, %v445_v48 }
 0x556   :  { %448 = vrot.lane.b32.xlu1 %v447_v49, %s3187_s1 }
 0x5c8   :  { %v449_v50 = vpop.permute.xlu1 %448 }
 0x5c9   :  { %2668 = vmatmul.mubr.msk.f32.vlgmr.msra.gmra.mxu1 %vm241_vm2, %v449_v50 }
 0x5ca   :  { %2682 = vmatpush3.msra.mxu1 %v3319_v5  ;;  %2689 = vmatprep.mubr.msk.f32.mxu1 %vm3185_vm0, %v3184_v1 }
 0x5cb   :  { %2683 = vmatprep.subr.mxu1 %v3184_v1 }
 0x5cc   :  { %2684 = vmatpush3.msra.mxu1 %v3323_v6 }
 0x5cd   :  { %2685 = vmatprep.subr.mxu1 %v3184_v1 }
 0x5ce   :  { %2686 = vmatpush3.msra.mxu1 %v3329_v7 }
 0x5cf   :  { %2687 = vmatprep.subr.mxu1 %v3184_v1 }
 0x5d0   :  { %2688 = vmatpush3.msra.mxu1 %v3335_v8 }
 0x5d1   :  { %2703 = vmatprep.subr.mxu1 %v3184_v1 }
 0x689   :  { %v518_v51 = vpop.f32.mrf.mxu1 }
 0x68a   :  { %v523_v52 = vrot.slane %v518_v51, 4 }
 0x68b   :  { %v2669_v53 = vpop.f32.mrf.mxu1 }
 0x68c   :  { %v525_v54 = vadd.f32 %v523_v52, %v3359_v13 }
 0x68e   :  { %2909 = vtanh.f32 %v525_v54  ;;  %v2447_v56 = vmul.f32 -1.442695, %v525_v54 }
 0x690   :  { %2911 = vpow2.f32 %v2447_v56 }
 0x69b   :  { %v2910_v55 = vpop.eup %2909 }
 0x69c   :  { %538 = vrot.lane.b32.xlu0 %v2910_v55, %s3186_s0 }
 0x69d   :  { %v2912_v57 = vpop.eup %2911 }
 0x69e   :  { %v529_v58 = vadd.f32 1.0, %v2912_v57 }
 0x6a0   :  { %2913 = vrcp.f32 %v529_v58 }
 0x6ad   :  { %v2914_v59 = vpop.eup %2913 }
 0x6ae   :  { %v536_v63 = vmul.f32 %v2914_v59, %v534_v62 }
 0x70e   :  { %v539_v60 = vpop.permute.xlu0 %538 }
 0x70f   :  { %v541_v61 = vmul.f32 %v2914_v59, %v539_v60 }
 0x711   :  { %543 = vrot.lane.b32.xlu1 %v541_v61, %s3187_s1 }
 0x783   :  { %v544_v0 = vpop.permute.xlu1 %543 }
 0x784   :  { %v546_v2 = vadd.f32 %v544_v0, %v536_v63 }
 0x786   :  { %2915 = vtanh.f32 %v546_v2  ;;  %v641_v27 = vrot.slane %v546_v2, 6 }
 0x793   :  { %v2916_v3 = vpop.eup %2915 }
 0x794   :  { %549 = vrot.lane.b32.xlu0 %v2916_v3, %s3186_s0 }
 0x806   :  { %v550_v4 = vpop.permute.xlu0 %549 }
 0x807   :  { %v552_v9 = vmul.f32 %v2914_v59, %v550_v4 }
 0x809   :  { %v554_v12 = vrot.slane %v552_v9, 4  ;;  %v1087_v14 = vsel %vm1086_vm4, %v1085_v10, %v552_v9 }
 0x80b   :  { %555 = vrot.lane.b32.xlu1 %v554_v12, %s3187_s1 }
 0x87d   :  { %v556_v15 = vpop.permute.xlu1 %555 }
 0x87e   :  { %2679 = vmatmul.mubr.msk.f32.vlgmr.msra.gmra.mxu0 %vm241_vm2, %v556_v15 }
 0x87f   :  { %2693 = vmatpush3.msra.mxu0 %v3319_v5  ;;  %2700 = vmatprep.mubr.msk.f32.mxu0 %vm3185_vm0, %v3184_v1 }
 0x880   :  { %2694 = vmatprep.subr.mxu0 %v3184_v1 }
 0x881   :  { %2695 = vmatpush3.msra.mxu0 %v3323_v6 }
 0x882   :  { %2696 = vmatprep.subr.mxu0 %v3184_v1 }
 0x883   :  { %2697 = vmatpush3.msra.mxu0 %v3329_v7 }
 0x884   :  { %2698 = vmatprep.subr.mxu0 %v3184_v1 }
 0x885   :  { %2699 = vmatpush3.msra.mxu0 %v3335_v8 }
 0x886   :  { %2714 = vmatprep.subr.mxu0 %v3184_v1 }
 0x93e   :  { %v625_v16 = vpop.f32.mrf.mxu0 }
 0x93f   :  { %v630_v17 = vrot.slane %v625_v16, 2 }
 0x940   :  { %v2680_v18 = vpop.f32.mrf.mxu0 }
 0x941   :  { %v632_v19 = vadd.f32 %v630_v17, %v3359_v13 }
 0x943   :  { %2917 = vtanh.f32 %v632_v19  ;;  %v2449_v21 = vmul.f32 -1.442695, %v632_v19 }
 0x945   :  { %2919 = vpow2.f32 %v2449_v21 }
 0x950   :  { %v2918_v20 = vpop.eup %2917 }
 0x951   :  { %645 = vrot.lane.b32.xlu0 %v2918_v20, %s3186_s0 }
 0x952   :  { %v2920_v22 = vpop.eup %2919 }
 0x953   :  { %v636_v23 = vadd.f32 1.0, %v2920_v22 }
 0x955   :  { %2921 = vrcp.f32 %v636_v23 }
 0x962   :  { %v2922_v24 = vpop.eup %2921 }
 0x963   :  { %v643_v28 = vmul.f32 %v2922_v24, %v641_v27 }
 0x9c3   :  { %v646_v25 = vpop.permute.xlu0 %645 }
 0x9c4   :  { %v648_v26 = vmul.f32 %v2922_v24, %v646_v25 }
 0x9c6   :  { %650 = vrot.lane.b32.xlu1 %v648_v26, %s3187_s1 }
 0xa38   :  { %v651_v29 = vpop.permute.xlu1 %650 }
 0xa39   :  { %v653_v30 = vadd.f32 %v651_v29, %v643_v28 }
 0xa3b   :  { %2923 = vtanh.f32 %v653_v30  ;;  %v745_v46 = vrot.slane %v653_v30, 6 }
 0xa48   :  { %v2924_v13 = vpop.eup %2923 }
 0xa49   :  { %656 = vrot.lane.b32.xlu0 %v2924_v13, %s3186_s0 }
 0xabb   :  { %v657_v31 = vpop.permute.xlu0 %656 }
 0xabc   :  { %v659_v32 = vmul.f32 %v2922_v24, %v657_v31 }
 0xabe   :  { %v661_v33 = vrot.slane %v659_v32, 6  ;;  %v3420_v34 = vsel %vm1088_vm5, %v1087_v14, %v659_v32 }
 0xac0   :  { %662 = vrot.lane.b32.xlu1 %v661_v33, %s3187_s1 }
 0xb32   :  { %v663_v35 = vpop.permute.xlu1 %662 }
 0xb33   :  { %2690 = vmatmul.mubr.msk.f32.vlgmr.msra.gmra.mxu1 %vm241_vm2, %v663_v35 }
 0xb34   :  { %2704 = vmatpush3.msra.mxu1 %v3319_v5  ;;  %2711 = vmatprep.mubr.msk.f32.mxu1 %vm3185_vm0, %v3184_v1 }
 0xb35   :  { %2705 = vmatprep.subr.mxu1 %v3184_v1 }
 0xb36   :  { %2706 = vmatpush3.msra.mxu1 %v3323_v6 }
 0xb37   :  { %2707 = vmatprep.subr.mxu1 %v3184_v1 }
 0xb38   :  { %2708 = vmatpush3.msra.mxu1 %v3329_v7 }
 0xb39   :  { %2709 = vmatprep.subr.mxu1 %v3184_v1 }
 0xb3a   :  { %2710 = vmatpush3.msra.mxu1 %v3335_v8 }
 0xbf3   :  { %v732_v36 = vpop.f32.mrf.mxu1 }
 0xbf4   :  { %v736_v37 = vadd.f32 %v732_v36, %v3357_v11 }
 0xbf5   :  { %v2691_v38 = vpop.f32.mrf.mxu1 }
 0xbf6   :  { %2925 = vtanh.f32 %v736_v37  ;;  %v2451_v40 = vmul.f32 -1.442695, %v736_v37 }
 0xbf8   :  { %2927 = vpow2.f32 %v2451_v40 }
 0xc03   :  { %v2926_v39 = vpop.eup %2925 }
 0xc04   :  { %749 = vrot.lane.b32.xlu0 %v2926_v39, %s3186_s0 }
 0xc05   :  { %v2928_v41 = vpop.eup %2927 }
 0xc06   :  { %v740_v42 = vadd.f32 1.0, %v2928_v41 }
 0xc08   :  { %2929 = vrcp.f32 %v740_v42 }
 0xc15   :  { %v2930_v43 = vpop.eup %2929 }
 0xc16   :  { %v747_v47 = vmul.f32 %v2930_v43, %v745_v46 }
 0xc76   :  { %v750_v44 = vpop.permute.xlu0 %749 }
 0xc77   :  { %v752_v45 = vmul.f32 %v2930_v43, %v750_v44 }
 0xc79   :  { %754 = vrot.lane.b32.xlu1 %v752_v45, %s3187_s1 }
 0xceb   :  { %v755_v48 = vpop.permute.xlu1 %754 }
 0xcec   :  { %v757_v49 = vadd.f32 %v755_v48, %v747_v47 }
 0xcee   :  { %2931 = vtanh.f32 %v757_v49 }
 0xcfb   :  { %v2932_v50 = vpop.eup %2931 }
 0xcfc   :  { %760 = vrot.lane.b32.xlu0 %v2932_v50, %s3186_s0  ;;  %v1096_v50 = vld [vmem:[#allocation7 + $0x18] sm:$0xff] }
 0xcfd   :  { %2725 = vmatprep.subr.mxu1 %v1096_v50 }
 0xd6e   :  { %v761_v51 = vpop.permute.xlu0 %760 }
 0xd6f   :  { %v3437_v52 = vmul.f32 %v2930_v43, %v761_v51  ;;  %v1095_v51 = vld [vmem:[#allocation7 + $0x10] sm:$0xff] }
 0xd71   :  { %765 = vrot.lane.b32.xlu1 %v3437_v52, %s3187_s1 }
 0xde3   :  { %v766_v53 = vpop.permute.xlu1 %765 }
 0xde4   :  { %2701 = vmatmul.mubr.msk.f32.vlgmr.msra.gmra.mxu0 %vm241_vm2, %v766_v53  ;;  %v1094_v53 = vld [vmem:[#allocation7 + $0x8] sm:$0xff] }
 0xde5   :  { %2715 = vmatpush3.msra.mxu0 %v3319_v5  ;;  %2722 = vmatprep.mubr.msk.f32.mxu0 %vm3185_vm0, %v3184_v1 }
 0xde6   :  { %2716 = vmatprep.subr.mxu0 %v3184_v1 }
 0xde7   :  { %2717 = vmatpush3.msra.mxu0 %v3323_v6 }
 0xde8   :  { %2718 = vmatprep.subr.mxu0 %v3184_v1 }
 0xde9   :  { %2719 = vmatpush3.msra.mxu0 %v3329_v7 }
 0xdea   :  { %2720 = vmatprep.subr.mxu0 %v3184_v1 }
 0xdeb   :  { %2721 = vmatpush3.msra.mxu0 %v3335_v8  ;;  %v851_v8 = vrot.slane %v757_v49, 6 }
 0xdec   :  { %2736 = vmatprep.subr.mxu0 %v3184_v1 }
 0xea4   :  { %v835_v54 = vpop.f32.mrf.mxu0 }
 0xea5   :  { %v840_v55 = vrot.slane %v835_v54, 6  ;;  %v3492_v54 = vld [vmem:[%s3681_s5 + $0x8] sm:$0xff] }
 0xea6   :  { %v2702_v5 = vpop.f32.mrf.mxu0 }
 0xea7   :  { %v842_v56 = vadd.f32 %v840_v55, %v3357_v11  ;;  %v1093_v55 = vld [vmem:[#allocation7] sm:$0xff] }
 0xea9   :  { %2933 = vtanh.f32 %v842_v56  ;;  %v2453_v6 = vmul.f32 -1.442695, %v842_v56  ;;  %v3503_v56 = vld [vmem:[%s3681_s5] sm:$0xff] }
 0xeab   :  { %2935 = vpow2.f32 %v2453_v6 }
 0xeb6   :  { %v2934_v57 = vpop.eup %2933 }
 0xeb7   :  { %855 = vrot.lane.b32.xlu0 %v2934_v57, %s3186_s0 }
 0xeb8   :  { %v2936_v58 = vpop.eup %2935 }
 0xeb9   :  { %v846_v59 = vadd.f32 1.0, %v2936_v58 }
 0xebb   :  { %2937 = vrcp.f32 %v846_v59 }
 0xec8   :  { %v2938_v7 = vpop.eup %2937 }
 0xec9   :  { %v853_v62 = vmul.f32 %v2938_v7, %v851_v8 }
 0xf29   :  { %v856_v60 = vpop.permute.xlu0 %855 }
 0xf2a   :  { %v858_v61 = vmul.f32 %v2938_v7, %v856_v60 }
 0xf2c   :  { %860 = vrot.lane.b32.xlu1 %v858_v61, %s3187_s1  ;;  %v2458_v61 = vld [vmem:[%s3682_s6] ss:$0 sm:$0xff] }
 0xf9e   :  { %v861_v63 = vpop.permute.xlu1 %860 }
 0xf9f   :  { %v863_v0 = vadd.f32 %v861_v63, %v853_v62 }
 0xfa1   :  { %2939 = vtanh.f32 %v863_v0  ;;  %v958_v24 = vrot.slane %v863_v0, 6 }
 0xfae   :  { %v2940_v2 = vpop.eup %2939 }
 0xfaf   :  { %866 = vrot.lane.b32.xlu0 %v2940_v2, %s3186_s0 }
0x1021   :  { %v867_v3 = vpop.permute.xlu0 %866 }
0x1022   :  { %v869_v4 = vmul.f32 %v2938_v7, %v867_v3 }
0x1024   :  { %v871_v9 = vrot.slane %v869_v4, 2  ;;  %v1090_v13 = vsel %vm1084_vm3, %v3437_v52, %v869_v4  ;;  %v3480_v52 = vld [vmem:[%s3681_s5 + $0x18] sm:$0xff] }
0x1026   :  { %872 = vrot.lane.b32.xlu1 %v871_v9, %s3187_s1 }
0x1098   :  { %v873_v10 = vpop.permute.xlu1 %872 }
0x1099   :  { %2712 = vmatmul.mubr.msk.f32.vlgmr.msra.gmra.mxu1 %vm241_vm2, %v873_v10 }
0x109a   :  { %2726 = vmatpush3.msra.mxu1 %v1096_v50 }
0x109b   :  { %2727 = vmatprep.subr.mxu1 %v1095_v51 }
0x109c   :  { %2728 = vmatpush3.msra.mxu1 %v1095_v51 }
0x109d   :  { %2729 = vmatprep.subr.mxu1 %v1094_v53 }
0x109e   :  { %2730 = vmatpush3.msra.mxu1 %v1094_v53 }
0x109f   :  { %2731 = vmatprep.subr.mxu1 %v1093_v55 }
0x10a0   :  { %2732 = vmatpush3.msra.mxu1 %v1093_v55 }
0x10a1   :  { %2747 = vmatprep.subr.mxu1 %v3184_v1 }
0x1159   :  { %v942_v12 = vpop.f32.mrf.mxu1 }
0x115a   :  { %v947_v14 = vrot.slane %v942_v12, 4 }
0x115b   :  { %v2713_v15 = vpop.f32.mrf.mxu1 }
0x115c   :  { %v949_v16 = vadd.f32 %v947_v14, %v3357_v11 }
0x115e   :  { %2941 = vtanh.f32 %v949_v16  ;;  %v2455_v18 = vmul.f32 -1.442695, %v949_v16 }
0x1160   :  { %2943 = vpow2.f32 %v2455_v18 }
0x116b   :  { %v2942_v17 = vpop.eup %2941 }
0x116c   :  { %962 = vrot.lane.b32.xlu0 %v2942_v17, %s3186_s0 }
0x116d   :  { %v2944_v19 = vpop.eup %2943 }
0x116e   :  { %v953_v20 = vadd.f32 1.0, %v2944_v19 }
0x1170   :  { %2945 = vrcp.f32 %v953_v20 }
0x117d   :  { %v2946_v21 = vpop.eup %2945 }
0x117e   :  { %v960_v25 = vmul.f32 %v2946_v21, %v958_v24 }
0x11de   :  { %v963_v22 = vpop.permute.xlu0 %962 }
0x11df   :  { %v965_v23 = vmul.f32 %v2946_v21, %v963_v22 }
0x11e1   :  { %967 = vrot.lane.b32.xlu1 %v965_v23, %s3187_s1 }
0x1253   :  { %v968_v26 = vpop.permute.xlu1 %967 }
0x1254   :  { %v970_v27 = vadd.f32 %v968_v26, %v960_v25 }
0x1256   :  { %2947 = vtanh.f32 %v970_v27  ;;  %v1065_v46 = vrot.slane %v970_v27, 6 }
0x1263   :  { %v2948_v28 = vpop.eup %2947 }
0x1264   :  { %973 = vrot.lane.b32.xlu0 %v2948_v28, %s3186_s0 }
0x12d6   :  { %v974_v29 = vpop.permute.xlu0 %973 }
0x12d7   :  { %v976_v30 = vmul.f32 %v2946_v21, %v974_v29 }
0x12d9   :  { %v978_v31 = vrot.slane %v976_v30, 4  ;;  %v3465_v32 = vsel %vm1086_vm4, %v1090_v13, %v976_v30 }
0x12db   :  { %979 = vrot.lane.b32.xlu1 %v978_v31, %s3187_s1 }
0x134d   :  { %v980_v33 = vpop.permute.xlu1 %979 }
0x134e   :  { %2723 = vmatmul.mubr.msk.f32.vlgmr.msra.gmra.mxu0 %vm241_vm2, %v980_v33 }
0x134f   :  { %2744 = vmatprep.mubr.msk.f32.mxu0 %vm3185_vm0, %v3184_v1  ;;  %2737 = vmatpush3.msra.mxu0 %v3480_v52 }
0x1350   :  { %2738 = vmatprep.subr.mxu0 %v3184_v1 }
0x140e   :  { %v1049_v35 = vpop.f32.mrf.mxu0 }
0x140f   :  { %v1054_v36 = vrot.slane %v1049_v35, 2 }
0x1410   :  { %v2724_v37 = vpop.f32.mrf.mxu0 }
0x1411   :  { %v1056_v38 = vadd.f32 %v1054_v36, %v3357_v11 }
0x1413   :  { %2949 = vtanh.f32 %v1056_v38  ;;  %v2457_v40 = vmul.f32 -1.442695, %v1056_v38 }
0x1415   :  { %2951 = vpow2.f32 %v2457_v40 }
0x1420   :  { %v2950_v39 = vpop.eup %2949 }
0x1421   :  { %1069 = vrot.lane.b32.xlu0 %v2950_v39, %s3186_s0 }
0x1422   :  { %v2952_v41 = vpop.eup %2951 }
0x1423   :  { %v1060_v42 = vadd.f32 1.0, %v2952_v41 }
0x1425   :  { %2953 = vrcp.f32 %v1060_v42 }
0x1432   :  { %v2954_v43 = vpop.eup %2953 }
0x1433   :  { %v1067_v47 = vmul.f32 %v2954_v43, %v1065_v46 }
0x1493   :  { %v1070_v44 = vpop.permute.xlu0 %1069 }
0x1494   :  { %v1072_v45 = vmul.f32 %v2954_v43, %v1070_v44 }
0x1496   :  { %1074 = vrot.lane.b32.xlu1 %v1072_v45, %s3187_s1 }
0x149a   :  { %1110 = vrot.lane.b32.xlu1 %v3420_v34, %s3187_s1  ;;  %v3486_v34 = vld [vmem:[%s3681_s5 + $0x10] sm:$0xff] }
0x149b   :  { %2739 = vmatpush3.msra.mxu0 %v3486_v34 }
0x149c   :  { %2740 = vmatprep.subr.mxu0 %v3184_v1 }
0x149d   :  { %2741 = vmatpush3.msra.mxu0 %v3492_v54 }
0x149e   :  { %2742 = vmatprep.subr.mxu0 %v3184_v1 }
0x149f   :  { %2743 = vmatpush3.msra.mxu0 %v3503_v56 }
0x14a0   :  { %2745 = vmatmul.mubr.f32.vlgmr.msra.gmra.mxu0 %v3184_v1  ;;  %2758 = vmatprep.subr.mxu0 %v3184_v1 }
0x14a1   :  { %2759 = vmatpush3.msra.mxu0 %v3480_v52  ;;  %2766 = vmatprep.mubr.msk.f32.mxu0 %vm3185_vm0, %v3184_v1 }
0x14a2   :  { %2760 = vmatprep.subr.mxu0 %v3184_v1 }
0x14a3   :  { %2761 = vmatpush3.msra.mxu0 %v3486_v34 }
0x14a4   :  { %2762 = vmatprep.subr.mxu0 %v3184_v1 }
0x14a5   :  { %2763 = vmatpush3.msra.mxu0 %v3492_v54 }
0x14a6   :  { %2764 = vmatprep.subr.mxu0 %v3184_v1 }
0x14a7   :  { %2765 = vmatpush3.msra.mxu0 %v3503_v56 }
0x14a8   :  { %2780 = vmatprep.subr.mxu0 %v3184_v1 }
0x1508   :  { %v1075_v11 = vpop.permute.xlu1 %1074 }
0x1509   :  { %v1077_v48 = vadd.f32 %v1075_v11, %v1067_v47 }
0x150b   :  { %2955 = vtanh.f32 %v1077_v48 }
0x150c   :  { %v1111_v49 = vpop.permute.xlu1 %1110 }
0x150d   :  { %2733 = vmatprep.mubr.msk.f32.mxu1 %vm241_vm2, %v1111_v49 }
0x1518   :  { %v2956_v5 = vpop.eup %2955 }
0x1519   :  { %1080 = vrot.lane.b32.xlu0 %v2956_v5, %s3186_s0 }
0x1560   :  { %v1259_v7 = vpop.f32.mrf.mxu0 }
0x1562   :  { %v2746_v60 = vpop.f32.mrf.mxu0 }
0x158b   :  { %v1081_v57 = vpop.permute.xlu0 %1080 }
0x158c   :  { %v1083_v6 = vmul.f32 %v2954_v43, %v1081_v57 }
0x158e   :  { %v1092_v58 = vsel %vm1088_vm5, %v3465_v32, %v1083_v6 }
0x158f   :  { %1112 = vrot.lane.b32.xlu0 %v1092_v58, %s3187_s1 }
0x1601   :  { %v1113_v59 = vpop.permute.xlu0 %1112 }
0x1602   :  { %2734 = vmatmul.mubr.msk.f32.vlgmr.msra.gmra.mxu1 %vm241_vm2, %v1113_v59 }
0x1603   :  { %2748 = vmatpush3.msra.mxu1 %v3480_v52  ;;  %2755 = vmatprep.mubr.msk.f32.mxu1 %vm3185_vm0, %v3184_v1 }
0x1604   :  { %2749 = vmatprep.subr.mxu1 %v3184_v1 }
0x1605   :  { %2750 = vmatpush3.msra.mxu1 %v3486_v34 }
0x1606   :  { %2751 = vmatprep.subr.mxu1 %v3184_v1 }
0x1607   :  { %2752 = vmatpush3.msra.mxu1 %v3492_v54 }
0x1608   :  { %2753 = vmatprep.subr.mxu1 %v3184_v1 }
0x1609   :  { %2754 = vmatpush3.msra.mxu1 %v3503_v56 }
0x160a   :  { %2769 = vmatprep.subr.mxu1 %v3184_v1 }
0x16c2   :  { %v2735_v8 = vpop.f32.mrf.mxu1 }
0x16c3   :  { %v3535_v62 = vadd.f32 %v2735_v8, %v2458_v61 }
0x16c4   :  { %v1184_v63 = vpop.f32.mrf.mxu1 }
0x16c5   :  { %v3537_v0 = vadd.f32 %v2458_v61, %v1184_v63 }
0x16c7   :  { %v1263_v2 = vadd.f32 %v1259_v7, %v3537_v0 }
0x16c9   :  { %2957 = vtanh.f32 %v1263_v2  ;;  %v2461_v4 = vmul.f32 -1.442695, %v1263_v2 }
0x16cb   :  { %2959 = vpow2.f32 %v2461_v4 }
0x16d6   :  { %v2958_v3 = vpop.eup %2957 }
0x16d7   :  { %1273 = vrot.lane.b32.xlu1 %v2958_v3, %s3186_s0 }
0x16d8   :  { %v2960_v9 = vpop.eup %2959 }
0x16d9   :  { %v1267_v10 = vadd.f32 1.0, %v2960_v9 }
0x16db   :  { %2961 = vrcp.f32 %v1267_v10 }
0x16e8   :  { %v2962_v12 = vpop.eup %2961 }
0x16e9   :  { %v1271_v16 = vmul.f32 0.0, %v2962_v12 }
0x1749   :  { %v1274_v14 = vpop.permute.xlu1 %1273 }
0x174a   :  { %v1276_v15 = vmul.f32 %v2962_v12, %v1274_v14 }
0x174c   :  { %1278 = vrot.lane.b32.xlu0 %v1276_v15, %s3187_s1 }
0x17be   :  { %v1279_v17 = vpop.permute.xlu0 %1278 }
0x17bf   :  { %v1281_v18 = vadd.f32 %v1279_v17, %v1271_v16 }
0x17c1   :  { %2963 = vtanh.f32 %v1281_v18  ;;  %v1375_v33 = vrot.slane %v1281_v18, 6 }
0x17ce   :  { %v2964_v19 = vpop.eup %2963 }
0x17cf   :  { %1284 = vrot.lane.b32.xlu1 %v2964_v19, %s3186_s0 }
0x1841   :  { %v1285_v20 = vpop.permute.xlu1 %1284 }
0x1842   :  { %v1287_v21 = vmul.f32 %v2962_v12, %v1285_v20 }
0x1844   :  { %1289 = vrot.lane.b32.xlu0 %v1287_v21, %s3187_s1 }
0x18b6   :  { %v1290_v22 = vpop.permute.xlu0 %1289 }
0x18b7   :  { %2756 = vmatmul.mubr.msk.f32.vlgmr.msra.gmra.mxu1 %vm241_vm2, %v1290_v22 }
0x18b8   :  { %2770 = vmatpush3.msra.mxu1 %v3480_v52  ;;  %2777 = vmatprep.mubr.msk.f32.mxu1 %vm3185_vm0, %v3184_v1 }
0x18b9   :  { %2771 = vmatprep.subr.mxu1 %v3184_v1 }
0x18ba   :  { %2772 = vmatpush3.msra.mxu1 %v3486_v34 }
0x18bb   :  { %2773 = vmatprep.subr.mxu1 %v3184_v1 }
0x18bc   :  { %2774 = vmatpush3.msra.mxu1 %v3492_v54 }
0x18bd   :  { %2775 = vmatprep.subr.mxu1 %v3184_v1 }
0x18be   :  { %2776 = vmatpush3.msra.mxu1 %v3503_v56 }
0x18bf   :  { %2791 = vmatprep.subr.mxu1 %v3184_v1 }
0x1977   :  { %v1359_v23 = vpop.f32.mrf.mxu1 }
0x1978   :  { %v1364_v24 = vrot.slane %v1359_v23, 6 }
0x1979   :  { %v2757_v25 = vpop.f32.mrf.mxu1 }
0x197a   :  { %v1366_v26 = vadd.f32 %v1364_v24, %v3537_v0 }
0x197c   :  { %2965 = vtanh.f32 %v1366_v26  ;;  %v2463_v28 = vmul.f32 -1.442695, %v1366_v26 }
0x197e   :  { %2967 = vpow2.f32 %v2463_v28 }
0x1989   :  { %v2966_v27 = vpop.eup %2965 }
0x198a   :  { %1379 = vrot.lane.b32.xlu1 %v2966_v27, %s3186_s0 }
0x198b   :  { %v2968_v29 = vpop.eup %2967 }
0x198c   :  { %v1370_v30 = vadd.f32 1.0, %v2968_v29 }
0x198e   :  { %2969 = vrcp.f32 %v1370_v30 }
0x199b   :  { %v2970_v13 = vpop.eup %2969 }
0x199c   :  { %v1377_v35 = vmul.f32 %v2970_v13, %v1375_v33 }
0x19fc   :  { %v1380_v31 = vpop.permute.xlu1 %1379 }
0x19fd   :  { %v1382_v32 = vmul.f32 %v2970_v13, %v1380_v31 }
0x19ff   :  { %1384 = vrot.lane.b32.xlu0 %v1382_v32, %s3187_s1 }
0x1a71   :  { %v1385_v36 = vpop.permute.xlu0 %1384 }
0x1a72   :  { %v1387_v37 = vadd.f32 %v1385_v36, %v1377_v35 }
0x1a74   :  { %2971 = vtanh.f32 %v1387_v37  ;;  %v1482_v55 = vrot.slane %v1387_v37, 6 }
0x1a81   :  { %v2972_v38 = vpop.eup %2971 }
0x1a82   :  { %1390 = vrot.lane.b32.xlu1 %v2972_v38, %s3186_s0 }
0x1af4   :  { %v1391_v39 = vpop.permute.xlu1 %1390 }
0x1af5   :  { %v1393_v40 = vmul.f32 %v2970_v13, %v1391_v39 }
0x1af7   :  { %v1395_v41 = vrot.slane %v1393_v40, 2 }
0x1af9   :  { %1396 = vrot.lane.b32.xlu0 %v1395_v41, %s3187_s1 }
0x1b6b   :  { %v1397_v42 = vpop.permute.xlu0 %1396 }
0x1b6c   :  { %2767 = vmatmul.mubr.msk.f32.vlgmr.msra.gmra.mxu0 %vm241_vm2, %v1397_v42 }
0x1b6d   :  { %2781 = vmatpush3.msra.mxu0 %v3480_v52  ;;  %2788 = vmatprep.mubr.msk.f32.mxu0 %vm3185_vm0, %v3184_v1 }
0x1b6e   :  { %2782 = vmatprep.subr.mxu0 %v3184_v1 }
0x1b6f   :  { %2783 = vmatpush3.msra.mxu0 %v3486_v34 }
0x1b70   :  { %2784 = vmatprep.subr.mxu0 %v3184_v1 }
0x1b71   :  { %2785 = vmatpush3.msra.mxu0 %v3492_v54 }
0x1b72   :  { %2786 = vmatprep.subr.mxu0 %v3184_v1 }
0x1b73   :  { %2787 = vmatpush3.msra.mxu0 %v3503_v56 }
0x1b74   :  { %2802 = vmatprep.subr.mxu0 %v3184_v1 }
0x1c2c   :  { %v1466_v43 = vpop.f32.mrf.mxu0 }
0x1c2d   :  { %v1471_v44 = vrot.slane %v1466_v43, 4 }
0x1c2e   :  { %v2768_v45 = vpop.f32.mrf.mxu0 }
0x1c2f   :  { %v1473_v46 = vadd.f32 %v1471_v44, %v3537_v0 }
0x1c31   :  { %2973 = vtanh.f32 %v1473_v46  ;;  %v2465_v11 = vmul.f32 -1.442695, %v1473_v46 }
0x1c33   :  { %2975 = vpow2.f32 %v2465_v11 }
0x1c3e   :  { %v2974_v47 = vpop.eup %2973 }
0x1c3f   :  { %1486 = vrot.lane.b32.xlu1 %v2974_v47, %s3186_s0 }
0x1c40   :  { %v2976_v48 = vpop.eup %2975 }
0x1c41   :  { %v1477_v49 = vadd.f32 1.0, %v2976_v48 }
0x1c43   :  { %2977 = vrcp.f32 %v1477_v49 }
0x1c50   :  { %v2978_v50 = vpop.eup %2977 }
0x1c51   :  { %v1484_v5 = vmul.f32 %v2978_v50, %v1482_v55 }
0x1cb1   :  { %v1487_v51 = vpop.permute.xlu1 %1486 }
0x1cb2   :  { %v1489_v53 = vmul.f32 %v2978_v50, %v1487_v51 }
0x1cb4   :  { %1491 = vrot.lane.b32.xlu0 %v1489_v53, %s3187_s1 }
0x1d26   :  { %v1492_v57 = vpop.permute.xlu0 %1491 }
0x1d27   :  { %v1494_v6 = vadd.f32 %v1492_v57, %v1484_v5 }
0x1d29   :  { %2979 = vtanh.f32 %v1494_v6  ;;  %v1589_v17 = vrot.slane %v1494_v6, 6 }
0x1d36   :  { %v2980_v58 = vpop.eup %2979 }
0x1d37   :  { %1497 = vrot.lane.b32.xlu1 %v2980_v58, %s3186_s0 }
0x1da9   :  { %v1498_v59 = vpop.permute.xlu1 %1497 }
0x1daa   :  { %v1500_v7 = vmul.f32 %v2978_v50, %v1498_v59 }
0x1dac   :  { %v1502_v60 = vrot.slane %v1500_v7, 4 }
0x1dae   :  { %1503 = vrot.lane.b32.xlu0 %v1502_v60, %s3187_s1 }
0x1e20   :  { %v1504_v61 = vpop.permute.xlu0 %1503 }
0x1e21   :  { %2778 = vmatmul.mubr.msk.f32.vlgmr.msra.gmra.mxu1 %vm241_vm2, %v1504_v61 }
0x1e22   :  { %2792 = vmatpush3.msra.mxu1 %v3480_v52  ;;  %2799 = vmatprep.mubr.msk.f32.mxu1 %vm3185_vm0, %v3184_v1 }
0x1e23   :  { %2793 = vmatprep.subr.mxu1 %v3184_v1 }
0x1e24   :  { %2794 = vmatpush3.msra.mxu1 %v3486_v34 }
0x1e25   :  { %2795 = vmatprep.subr.mxu1 %v3184_v1 }
0x1e26   :  { %2796 = vmatpush3.msra.mxu1 %v3492_v54 }
0x1e27   :  { %2797 = vmatprep.subr.mxu1 %v3184_v1 }
0x1e28   :  { %2798 = vmatpush3.msra.mxu1 %v3503_v56 }
0x1e29   :  { %2813 = vmatprep.subr.mxu1 %v3184_v1 }
0x1ee1   :  { %v1573_v8 = vpop.f32.mrf.mxu1 }
0x1ee2   :  { %v1578_v63 = vrot.slane %v1573_v8, 2 }
0x1ee3   :  { %v2779_v2 = vpop.f32.mrf.mxu1 }
0x1ee4   :  { %v1580_v3 = vadd.f32 %v1578_v63, %v3537_v0 }
0x1ee6   :  { %2981 = vtanh.f32 %v1580_v3  ;;  %v2467_v9 = vmul.f32 -1.442695, %v1580_v3 }
0x1ee8   :  { %2983 = vpow2.f32 %v2467_v9 }
0x1ef3   :  { %v2982_v4 = vpop.eup %2981 }
0x1ef4   :  { %1593 = vrot.lane.b32.xlu1 %v2982_v4, %s3186_s0 }
0x1ef5   :  { %v2984_v10 = vpop.eup %2983 }
0x1ef6   :  { %v1584_v12 = vadd.f32 1.0, %v2984_v10 }
0x1ef8   :  { %2985 = vrcp.f32 %v1584_v12 }
0x1f05   :  { %v2986_v14 = vpop.eup %2985 }
0x1f06   :  { %v1591_v18 = vmul.f32 %v2986_v14, %v1589_v17 }
0x1f66   :  { %v1594_v15 = vpop.permute.xlu1 %1593 }
0x1f67   :  { %v1596_v16 = vmul.f32 %v2986_v14, %v1594_v15 }
0x1f69   :  { %1598 = vrot.lane.b32.xlu0 %v1596_v16, %s3187_s1 }
0x1fdb   :  { %v1599_v19 = vpop.permute.xlu0 %1598 }
0x1fdc   :  { %v1601_v20 = vadd.f32 %v1599_v19, %v1591_v18 }
0x1fde   :  { %2987 = vtanh.f32 %v1601_v20  ;;  %v1693_v35 = vrot.slane %v1601_v20, 6 }
0x1feb   :  { %v2988_v0 = vpop.eup %2987 }
0x1fec   :  { %1604 = vrot.lane.b32.xlu1 %v2988_v0, %s3186_s0 }
0x205e   :  { %v1605_v21 = vpop.permute.xlu1 %1604 }
0x205f   :  { %v1607_v22 = vmul.f32 %v2986_v14, %v1605_v21 }
0x2061   :  { %v1609_v23 = vrot.slane %v1607_v22, 6 }
0x2063   :  { %1610 = vrot.lane.b32.xlu0 %v1609_v23, %s3187_s1 }
0x20d5   :  { %v1611_v24 = vpop.permute.xlu0 %1610 }
0x20d6   :  { %2789 = vmatmul.mubr.msk.f32.vlgmr.msra.gmra.mxu0 %vm241_vm2, %v1611_v24 }
0x20d7   :  { %2803 = vmatpush3.msra.mxu0 %v3480_v52  ;;  %2810 = vmatprep.mubr.msk.f32.mxu0 %vm3185_vm0, %v3184_v1 }
0x20d8   :  { %2804 = vmatprep.subr.mxu0 %v3184_v1 }
0x20d9   :  { %2805 = vmatpush3.msra.mxu0 %v3486_v34 }
0x20da   :  { %2806 = vmatprep.subr.mxu0 %v3184_v1 }
0x20db   :  { %2807 = vmatpush3.msra.mxu0 %v3492_v54 }
0x20dc   :  { %2808 = vmatprep.subr.mxu0 %v3184_v1 }
0x20dd   :  { %2809 = vmatpush3.msra.mxu0 %v3503_v56 }
0x2196   :  { %v1680_v25 = vpop.f32.mrf.mxu0 }
0x2197   :  { %v1684_v26 = vadd.f32 %v1680_v25, %v3535_v62 }
0x2198   :  { %v2790_v27 = vpop.f32.mrf.mxu0 }
0x2199   :  { %2989 = vtanh.f32 %v1684_v26  ;;  %v2469_v29 = vmul.f32 -1.442695, %v1684_v26 }
0x219b   :  { %2991 = vpow2.f32 %v2469_v29 }
0x21a6   :  { %v2990_v28 = vpop.eup %2989 }
0x21a7   :  { %1697 = vrot.lane.b32.xlu1 %v2990_v28, %s3186_s0 }
0x21a8   :  { %v2992_v30 = vpop.eup %2991 }
0x21a9   :  { %v1688_v13 = vadd.f32 1.0, %v2992_v30 }
0x21ab   :  { %2993 = vrcp.f32 %v1688_v13 }
0x21b8   :  { %v2994_v31 = vpop.eup %2993 }
0x21b9   :  { %v1695_v36 = vmul.f32 %v2994_v31, %v1693_v35 }
0x2219   :  { %v1698_v32 = vpop.permute.xlu1 %1697 }
0x221a   :  { %v1700_v33 = vmul.f32 %v2994_v31, %v1698_v32 }
0x221c   :  { %1702 = vrot.lane.b32.xlu0 %v1700_v33, %s3187_s1 }
0x228e   :  { %v1703_v37 = vpop.permute.xlu0 %1702 }
0x228f   :  { %v1705_v38 = vadd.f32 %v1703_v37, %v1695_v36  ;;  %v2038_v36 = vld [vmem:[#allocation8 + $0x30] sm:$0xff]  ;;  %v2037_v37 = vld [vmem:[#allocation8 + $0x28] sm:$0xff] }
0x2291   :  { %2995 = vtanh.f32 %v1705_v38 }
0x229e   :  { %v2996_v39 = vpop.eup %2995 }
0x229f   :  { %1708 = vrot.lane.b32.xlu1 %v2996_v39, %s3186_s0  ;;  %v2035_v39 = vld [vmem:[#allocation8 + $0x18] sm:$0xff] }
0x2311   :  { %v1709_v40 = vpop.permute.xlu1 %1708 }
0x2312   :  { %v1711_v41 = vmul.f32 %v2994_v31, %v1709_v40  ;;  %v2034_v40 = vld [vmem:[#allocation8 + $0x10] sm:$0xff] }
0x2314   :  { %1713 = vrot.lane.b32.xlu0 %v1711_v41, %s3187_s1  ;;  %v2033_v41 = vld [vmem:[#allocation8 + $0x8] sm:$0xff] }
0x2386   :  { %v1714_v42 = vpop.permute.xlu0 %1713 }
0x2387   :  { %2800 = vmatmul.mubr.msk.f32.vlgmr.msra.gmra.mxu1 %vm241_vm2, %v1714_v42  ;;  %v2032_v42 = vld [vmem:[#allocation8] sm:$0xff] }
0x2388   :  { %2814 = vmatpush3.msra.mxu1 %v3480_v52  ;;  %2821 = vmatprep.mubr.msk.f32.mxu1 %vm3185_vm0, %v3184_v1 }
0x2389   :  { %2815 = vmatprep.subr.mxu1 %v3184_v1 }
0x238a   :  { %2816 = vmatpush3.msra.mxu1 %v3486_v34 }
0x238b   :  { %2817 = vmatprep.subr.mxu1 %v3184_v1 }
0x238c   :  { %2818 = vmatpush3.msra.mxu1 %v3492_v54 }
0x238d   :  { %2819 = vmatprep.subr.mxu1 %v3184_v1 }
0x238e   :  { %2820 = vmatpush3.msra.mxu1 %v3503_v56  ;;  %v1799_v56 = vrot.slane %v1705_v38, 6  ;;  %v2036_v38 = vld [vmem:[#allocation8 + $0x20] sm:$0xff] }
0x2447   :  { %v1783_v43 = vpop.f32.mrf.mxu1 }
0x2448   :  { %v1788_v44 = vrot.slane %v1783_v43, 6 }
0x2449   :  { %v2801_v45 = vpop.f32.mrf.mxu1 }
0x244a   :  { %v1790_v52 = vadd.f32 %v1788_v44, %v3535_v62  ;;  %v2162_v44 = vld [vmem:[#allocation10 + $0xf8] sm:$0xff] }
0x244b   :  { %v2146_v45 = vld [vmem:[#allocation10 + $0x78] sm:$0xff]  ;;  %2571 = vmatprep.subr.mxu1 %v2162_v44  ;;  %v2242_v44 = vld [vmem:[#allocation11 + $0x8] sm:$0xff] }
0x244c   :  { %2997 = vtanh.f32 %v1790_v52  ;;  %v2471_v47 = vmul.f32 -1.442695, %v1790_v52  ;;  %v2161_v52 = vld [vmem:[#allocation10 + $0xf0] sm:$0xff] }
0x244e   :  { %2999 = vpow2.f32 %v2471_v47  ;;  %v2160_v47 = vld [vmem:[#allocation10 + $0xe8] sm:$0xff] }
0x2459   :  { %v2998_v46 = vpop.eup %2997 }
0x245a   :  { %1803 = vrot.lane.b32.xlu1 %v2998_v46, %s3186_s0  ;;  %v2145_v46 = vld [vmem:[#allocation10 + $0x70] sm:$0xff] }
0x245b   :  { %v3000_v34 = vpop.eup %2999 }
0x245c   :  { %v1794_v11 = vadd.f32 1.0, %v3000_v34  ;;  %v2144_v34 = vld [vmem:[#allocation10 + $0x68] sm:$0xff] }
0x245e   :  { %3001 = vrcp.f32 %v1794_v11  ;;  %v2159_v11 = vld [vmem:[#allocation10 + $0xe0] sm:$0xff] }
0x246b   :  { %v3002_v48 = vpop.eup %3001 }
0x246c   :  { %v1801_v50 = vmul.f32 %v3002_v48, %v1799_v56 }
0x24cc   :  { %v1804_v54 = vpop.permute.xlu1 %1803 }
0x24cd   :  { %v1806_v49 = vmul.f32 %v3002_v48, %v1804_v54  ;;  %v2158_v54 = vld [vmem:[#allocation10 + $0xd8] sm:$0xff] }
0x24cf   :  { %1808 = vrot.lane.b32.xlu0 %v1806_v49, %s3187_s1  ;;  %v2142_v49 = vld [vmem:[#allocation10 + $0x58] sm:$0xff] }
0x2541   :  { %v1809_v51 = vpop.permute.xlu0 %1808 }
0x2542   :  { %v1811_v53 = vadd.f32 %v1809_v51, %v1801_v50  ;;  %v2157_v50 = vld [vmem:[#allocation10 + $0xd0] sm:$0xff] }
0x2544   :  { %3003 = vtanh.f32 %v1811_v53  ;;  %v1906_v12 = vrot.slane %v1811_v53, 6  ;;  %v2141_v53 = vld [vmem:[#allocation10 + $0x50] sm:$0xff] }
0x2551   :  { %v3004_v55 = vpop.eup %3003 }
0x2552   :  { %1814 = vrot.lane.b32.xlu1 %v3004_v55, %s3186_s0  ;;  %v2156_v55 = vld [vmem:[#allocation10 + $0xc8] sm:$0xff] }
0x25c4   :  { %v1815_v5 = vpop.permute.xlu1 %1814 }
0x25c5   :  { %v1817_v57 = vmul.f32 %v3002_v48, %v1815_v5  ;;  %v2143_v48 = vld [vmem:[#allocation10 + $0x60] sm:$0xff] }
0x25c7   :  { %v1819_v6 = vrot.slane %v1817_v57, 2  ;;  %v2140_v57 = vld [vmem:[#allocation10 + $0x48] sm:$0xff] }
0x25c9   :  { %1820 = vrot.lane.b32.xlu0 %v1819_v6, %s3187_s1  ;;  %v2155_v6 = vld [vmem:[#allocation10 + $0xc0] sm:$0xff] }
0x263b   :  { %v1821_v58 = vpop.permute.xlu0 %1820 }
0x263c   :  { %2811 = vmatmul.mubr.msk.f32.vlgmr.msra.gmra.mxu0 %vm241_vm2, %v1821_v58  ;;  %v2139_v58 = vld [vmem:[#allocation10 + $0x40] sm:$0xff] }
0x263d   :  { %2122 = vmatprep.mubr.f32.mxu0 %v3184_v1 }
0x26fc   :  { %v1890_v59 = vpop.f32.mrf.mxu0 }
0x26fd   :  { %v1895_v7 = vrot.slane %v1890_v59, 4  ;;  %v2154_v59 = vld [vmem:[#allocation10 + $0xb8] sm:$0xff] }
0x26fe   :  { %v2812_v60 = vpop.f32.mrf.mxu0 }
0x26ff   :  { %v1897_v61 = vadd.f32 %v1895_v7, %v3535_v62  ;;  %v2138_v7 = vld [vmem:[#allocation10 + $0x38] sm:$0xff]  ;;  %v2153_v60 = vld [vmem:[#allocation10 + $0xb0] sm:$0xff] }
0x2701   :  { %3005 = vtanh.f32 %v1897_v61  ;;  %v2473_v63 = vmul.f32 -1.442695, %v1897_v61  ;;  %v2137_v61 = vld [vmem:[#allocation10 + $0x30] sm:$0xff] }
0x2703   :  { %3007 = vpow2.f32 %v2473_v63  ;;  %v2136_v63 = vld [vmem:[#allocation10 + $0x28] sm:$0xff] }
0x270e   :  { %v3006_v8 = vpop.eup %3005 }
0x270f   :  { %1910 = vrot.lane.b32.xlu1 %v3006_v8, %s3186_s0  ;;  %v2152_v8 = vld [vmem:[#allocation10 + $0xa8] sm:$0xff] }
0x2710   :  { %v3008_v2 = vpop.eup %3007 }
0x2711   :  { %v1901_v3 = vadd.f32 1.0, %v3008_v2  ;;  %v2151_v2 = vld [vmem:[#allocation10 + $0xa0] sm:$0xff] }
0x2713   :  { %3009 = vrcp.f32 %v1901_v3  ;;  %v2135_v3 = vld [vmem:[#allocation10 + $0x20] sm:$0xff] }
0x2720   :  { %v3010_v4 = vpop.eup %3009 }
0x2721   :  { %v1908_v14 = vmul.f32 %v3010_v4, %v1906_v12  ;;  %v2149_v12 = vld [vmem:[#allocation10 + $0x90] sm:$0xff] }
0x2781   :  { %v1911_v9 = vpop.permute.xlu1 %1910 }
0x2782   :  { %v1913_v10 = vmul.f32 %v3010_v4, %v1911_v9  ;;  %v2150_v9 = vld [vmem:[#allocation10 + $0x98] sm:$0xff] }
0x2784   :  { %1915 = vrot.lane.b32.xlu0 %v1913_v10, %s3187_s1  ;;  %v2134_v10 = vld [vmem:[#allocation10 + $0x18] sm:$0xff] }
0x27f6   :  { %v1916_v15 = vpop.permute.xlu0 %1915 }
0x27f7   :  { %v1918_v16 = vadd.f32 %v1916_v15, %v1908_v14  ;;  %v2133_v14 = vld [vmem:[#allocation10 + $0x10] sm:$0xff]  ;;  %v2148_v15 = vld [vmem:[#allocation10 + $0x88] sm:$0xff] }
0x27f9   :  { %3011 = vtanh.f32 %v1918_v16  ;;  %v2013_v31 = vrot.slane %v1918_v16, 6  ;;  %v2132_v16 = vld [vmem:[#allocation10 + $0x8] sm:$0xff] }
0x2806   :  { %v3012_v17 = vpop.eup %3011 }
0x2807   :  { %1921 = vrot.lane.b32.xlu1 %v3012_v17, %s3186_s0  ;;  %v2147_v17 = vld [vmem:[#allocation10 + $0x80] sm:$0xff] }
0x2879   :  { %v1922_v18 = vpop.permute.xlu1 %1921 }
0x287a   :  { %v1924_v19 = vmul.f32 %v3010_v4, %v1922_v18  ;;  %v2131_v18 = vld [vmem:[#allocation10] sm:$0xff] }
0x287c   :  { %v1926_v20 = vrot.slane %v1924_v19, 4  ;;  %v2256_v19 = vld [vmem:[#allocation11 + $0x78] sm:$0xff] }
0x287e   :  { %1927 = vrot.lane.b32.xlu0 %v1926_v20, %s3187_s1  ;;  %v2255_v20 = vld [vmem:[#allocation11 + $0x70] sm:$0xff] }
0x28f0   :  { %v1928_v0 = vpop.permute.xlu0 %1927 }
0x28f1   :  { %2822 = vmatmul.mubr.msk.f32.vlgmr.msra.gmra.mxu1 %vm241_vm2, %v1928_v0  ;;  %v2254_v0 = vld [vmem:[#allocation11 + $0x68] sm:$0xff] }
0x28f2   :  { %2572 = vmatpush3.msra.mxu1 %v2146_v45  ;;  %v2241_v45 = vld [vmem:[#allocation11] sm:$0xff] }
0x28f3   :  { %2573 = vmatprep.subr.mxu1 %v2161_v52  ;;  %v2342_v52 = vld [vmem:[#allocation13 + $0x38] sm:$0xff] }
0x28f4   :  { %2574 = vmatpush3.msra.mxu1 %v2145_v46  ;;  %v2341_v46 = vld [vmem:[#allocation13 + $0x30] sm:$0xff] }
0x28f5   :  { %2575 = vmatprep.subr.mxu1 %v2160_v47  ;;  %v2340_v47 = vld [vmem:[#allocation13 + $0x28] sm:$0xff] }
0x28f6   :  { %2576 = vmatpush3.msra.mxu1 %v2144_v34  ;;  %v2339_v34 = vld [vmem:[#allocation13 + $0x20] sm:$0xff] }
0x28f7   :  { %2577 = vmatprep.subr.mxu1 %v2159_v11  ;;  %v2338_v11 = vld [vmem:[#allocation13 + $0x18] sm:$0xff] }
0x28f8   :  { %2578 = vmatpush3.msra.mxu1 %v2143_v48 }
0x28f9   :  { %2579 = vmatprep.subr.mxu1 %v2158_v54  ;;  %v2477_v54 = vld [vmem:[%s3686_s10] ss:$0 sm:$0xff] }
0x28fa   :  { %2580 = vmatpush3.msra.mxu1 %v2142_v49 }
0x28fb   :  { %2581 = vmatprep.subr.mxu1 %v2157_v50 }
0x28fc   :  { %2582 = vmatpush3.msra.mxu1 %v2141_v53  ;;  %v2337_v53 = vld [vmem:[#allocation13 + $0x10] sm:$0xff] }
0x28fd   :  { %2583 = vmatprep.subr.mxu1 %v2156_v55  ;;  %v2336_v55 = vld [vmem:[#allocation13 + $0x8] sm:$0xff] }
0x28fe   :  { %2584 = vmatpush3.msra.mxu1 %v2140_v57  ;;  %v2478_v57 = vld [vmem:[%s3688_s12] ss:$0 sm:$0xff] }
0x28ff   :  { %2585 = vmatprep.subr.mxu1 %v2155_v6 }
0x2900   :  { %2586 = vmatpush3.msra.mxu1 %v2139_v58 }
0x2901   :  { %2587 = vmatprep.subr.mxu1 %v2154_v59 }
0x2902   :  { %2588 = vmatpush3.msra.mxu1 %v2138_v7 }
0x2903   :  { %2589 = vmatprep.subr.mxu1 %v2153_v60  ;;  %v2479_v60 = vld [vmem:[#allocation2] ss:$0 sm:$0xff] }
0x2904   :  { %2590 = vmatpush3.msra.mxu1 %v2137_v61 }
0x2905   :  { %2591 = vmatprep.subr.mxu1 %v2152_v8 }
0x2906   :  { %2592 = vmatpush3.msra.mxu1 %v2136_v63 }
0x2907   :  { %2593 = vmatprep.subr.mxu1 %v2151_v2 }
0x2908   :  { %2594 = vmatpush3.msra.mxu1 %v2135_v3 }
0x2909   :  { %2595 = vmatprep.subr.mxu1 %v2150_v9 }
0x290a   :  { %2596 = vmatpush3.msra.mxu1 %v2134_v10 }
0x290b   :  { %2597 = vmatprep.subr.mxu1 %v2149_v12 }
0x290c   :  { %2598 = vmatpush3.msra.mxu1 %v2133_v14 }
0x290d   :  { %2599 = vmatprep.subr.mxu1 %v2148_v15 }
0x290e   :  { %2600 = vmatpush3.msra.mxu1 %v2132_v16 }
0x290f   :  { %2601 = vmatprep.subr.mxu1 %v2147_v17 }
0x2910   :  { %2602 = vmatpush3.msra.mxu1 %v2131_v18 }
0x2911   :  { %2859 = vmatprep.subr.mxu1 %v3184_v1 }
0x29b1   :  { %v1997_v21 = vpop.f32.mrf.mxu1 }
0x29b2   :  { %v2002_v22 = vrot.slane %v1997_v21, 2  ;;  %v2253_v21 = vld [vmem:[#allocation11 + $0x60] sm:$0xff] }
0x29b3   :  { %v2823_v23 = vpop.f32.mrf.mxu1 }
0x29b4   :  { %v2004_v24 = vadd.f32 %v2002_v22, %v3535_v62  ;;  %v2039_v62 = vld [vmem:[#allocation8 + $0x38] sm:$0xff]  ;;  %v2251_v23 = vld [vmem:[#allocation11 + $0x50] sm:$0xff] }
0x29b5   :  { %2082 = vmatprep.subr.mxu0 %v2039_v62  ;;  %v2252_v22 = vld [vmem:[#allocation11 + $0x58] sm:$0xff] }
0x29b6   :  { %3013 = vtanh.f32 %v2004_v24  ;;  %v2475_v26 = vmul.f32 -1.442695, %v2004_v24  ;;  %2083 = vmatpush1.msra.mxu0 %v2038_v36  ;;  %v2250_v24 = vld [vmem:[#allocation11 + $0x48] sm:$0xff] }
0x29b7   :  { %2084 = vmatprep.subr.mxu0 %v2037_v37 }
0x29b8   :  { %3015 = vpow2.f32 %v2475_v26  ;;  %2085 = vmatpush1.msra.mxu0 %v2036_v38  ;;  %v2248_v26 = vld [vmem:[#allocation11 + $0x38] sm:$0xff] }
0x29b9   :  { %2086 = vmatprep.subr.mxu0 %v2035_v39 }
0x29ba   :  { %2087 = vmatpush1.msra.mxu0 %v2034_v40 }
0x29bb   :  { %2088 = vmatprep.subr.mxu0 %v2033_v41  ;;  %v2245_v41 = vld [vmem:[#allocation11 + $0x20] sm:$0xff] }
0x29bc   :  { %2089 = vmatpush1.msra.mxu0 %v2032_v42  ;;  %v2244_v42 = vld [vmem:[#allocation11 + $0x18] sm:$0xff] }
0x29bd   :  { %2824 = vmatprep.subr.mxu0 %v3184_v1 }
0x29c3   :  { %v3014_v25 = vpop.eup %3013 }
0x29c4   :  { %2017 = vrot.lane.b32.xlu1 %v3014_v25, %s3186_s0  ;;  %v2249_v25 = vld [vmem:[#allocation11 + $0x40] sm:$0xff] }
0x29c5   :  { %v3016_v27 = vpop.eup %3015 }
0x29c6   :  { %v2008_v28 = vadd.f32 1.0, %v3016_v27  ;;  %v2247_v27 = vld [vmem:[#allocation11 + $0x30] sm:$0xff] }
0x29c8   :  { %3017 = vrcp.f32 %v2008_v28  ;;  %v2246_v28 = vld [vmem:[#allocation11 + $0x28] sm:$0xff] }
0x29d5   :  { %v3018_v29 = vpop.eup %3017 }
0x29d6   :  { %v2015_v32 = vmul.f32 %v3018_v29, %v2013_v31  ;;  %v2040_v31 = vld [vmem:[%s3684_s8] sm:$0x3] }
0x2a36   :  { %v2018_v30 = vpop.permute.xlu1 %2017 }
0x2a37   :  { %v2020_v13 = vmul.f32 %v3018_v29, %v2018_v30 }
0x2a39   :  { %2022 = vrot.lane.b32.xlu0 %v2020_v13, %s3187_s1 }
0x2aab   :  { %v2023_v33 = vpop.permute.xlu0 %2022 }
0x2aac   :  { %v2025_v35 = vadd.f32 %v2023_v33, %v2015_v32 }
0x2aae   :  { %3019 = vtanh.f32 %v2025_v35 }
0x2abb   :  { %v3020_v43 = vpop.eup %3019 }
0x2abc   :  { %2028 = vrot.lane.b32.xlu1 %v3020_v43, %s3186_s0  ;;  %v2243_v43 = vld [vmem:[#allocation11 + $0x10] sm:$0xff] }
0x2b2e   :  { %v2029_v56 = vpop.permute.xlu1 %2028 }
0x2b2f   :  { %v2031_v51 = vmul.f32 %v3018_v29, %v2029_v56  ;;  %v2042_v29 = vlaneseq }
0x2b31   :  { %v2053_v5 = vrot.slane %v2031_v51, 6  ;;  %v2043_v30 = vshrl.u32 %v2042_v29, 7 }
0x2b33   :  { %2054 = vrot.lane.b32.xlu0 %v2053_v5, %s3187_s1  ;;  %v2044_v13 = vsub.s32 0, %v2043_v30  ;;  %v2048_v32 = vsub.s32 1, %v2043_v30  ;;  %v2335_v5 = vld [vmem:[#allocation13] sm:$0xff] }
0x2b35   :  { %v2045_v33 = vrot.slane %v2040_v31, %v2044_v13  ;;  %v2049_v35 = vrot.slane %v2040_v31, %v2048_v32 }
0x2ba5   :  { %v2055_v4 = vpop.permute.xlu0 %2054 }
0x2ba6   :  { %2476 = vmatmul.mubr.msk.f32.vlgmr.msra.gmra.mxu0 %vm241_vm2, %v2055_v4 }
0x2ba7   :  { %2856 = vmatprep.mubr.msk.f32.mxu0 %vm3185_vm0, %v3184_v1  ;;  %2825 = vmatpush3.msra.mxu0 %v2256_v19 }
0x2ba8   :  { %2826 = vmatprep.subr.mxu0 %v3184_v1 }
0x2ba9   :  { %2827 = vmatpush3.msra.mxu0 %v2255_v20 }
0x2baa   :  { %2828 = vmatprep.subr.mxu0 %v3184_v1 }
0x2bab   :  { %2829 = vmatpush3.msra.mxu0 %v2254_v0 }
0x2bac   :  { %2830 = vmatprep.subr.mxu0 %v3184_v1 }
0x2bad   :  { %2831 = vmatpush3.msra.mxu0 %v2253_v21 }
0x2bae   :  { %2832 = vmatprep.subr.mxu0 %v3184_v1 }
0x2baf   :  { %2833 = vmatpush3.msra.mxu0 %v2252_v22 }
0x2bb0   :  { %2834 = vmatprep.subr.mxu0 %v3184_v1 }
0x2bb1   :  { %2835 = vmatpush3.msra.mxu0 %v2251_v23 }
0x2bb2   :  { %2836 = vmatprep.subr.mxu0 %v3184_v1 }
0x2bb3   :  { %2837 = vmatpush3.msra.mxu0 %v2250_v24 }
0x2bb4   :  { %2838 = vmatprep.subr.mxu0 %v3184_v1 }
0x2bb5   :  { %2839 = vmatpush3.msra.mxu0 %v2249_v25 }
0x2bb6   :  { %2840 = vmatprep.subr.mxu0 %v3184_v1 }
0x2bb7   :  { %2841 = vmatpush3.msra.mxu0 %v2248_v26 }
0x2bb8   :  { %2842 = vmatprep.subr.mxu0 %v3184_v1 }
0x2bb9   :  { %2843 = vmatpush3.msra.mxu0 %v2247_v27 }
0x2bba   :  { %2844 = vmatprep.subr.mxu0 %v3184_v1 }
0x2bbb   :  { %2845 = vmatpush3.msra.mxu0 %v2246_v28 }
0x2bbc   :  { %2846 = vmatprep.subr.mxu0 %v3184_v1 }
0x2bbd   :  { %2847 = vmatpush3.msra.mxu0 %v2245_v41 }
0x2bbe   :  { %2848 = vmatprep.subr.mxu0 %v3184_v1 }
0x2bbf   :  { %2849 = vmatpush3.msra.mxu0 %v2244_v42 }
0x2bc0   :  { %2850 = vmatprep.subr.mxu0 %v3184_v1 }
0x2bc1   :  { %2851 = vmatpush3.msra.mxu0 %v2243_v43 }
0x2bc2   :  { %2852 = vmatprep.subr.mxu0 %v3184_v1 }
0x2bc3   :  { %2853 = vmatpush3.msra.mxu0 %v2242_v44 }
0x2bc4   :  { %2854 = vmatprep.subr.mxu0 %v3184_v1 }
0x2bc5   :  { %2855 = vmatpush3.msra.mxu0 %v2241_v45 }
0x2c66   :  { %v2124_v62 = vpop.f32.mrf.mxu0 }
0x2c67   :  { %v2125_v36 = vadd.f32 %v2124_v62, %v2045_v33 }
0x2c68   :  { %v2126_v37 = vpop.f32.mrf.mxu0 }
0x2c69   :  { %v2127_v38 = vadd.f32 %v2126_v37, %v2049_v35  ;;  %v2129_v40 = vmax.f32 %v2125_v36, 0.0 }
0x2c6b   :  { %v2130_v39 = vmax.f32 %v2127_v38, 0.0 }
0x2c6d   :  { %2234 = vmatprep.mubr.f32.mxu1 %v2130_v39 }
0x2c6e   :  { %2235 = vmatmul.mubr.f32.vlgmr.msra.gmra.mxu1 %v2129_v40 }
0x2c6f   :  { %2875 = vmatprep.mubr.msk.f32.mxu1 %vm3185_vm0, %v3184_v1  ;;  %2860 = vmatpush3.msra.mxu1 %v2342_v52 }
0x2c70   :  { %2861 = vmatprep.subr.mxu1 %v3184_v1 }
0x2c71   :  { %2862 = vmatpush3.msra.mxu1 %v2341_v46 }
0x2c72   :  { %2863 = vmatprep.subr.mxu1 %v3184_v1 }
0x2c73   :  { %2864 = vmatpush3.msra.mxu1 %v2340_v47 }
0x2c74   :  { %2865 = vmatprep.subr.mxu1 %v3184_v1 }
0x2c75   :  { %2866 = vmatpush3.msra.mxu1 %v2339_v34 }
0x2c76   :  { %2867 = vmatprep.subr.mxu1 %v3184_v1 }
0x2c77   :  { %2868 = vmatpush3.msra.mxu1 %v2338_v11 }
0x2c78   :  { %2869 = vmatprep.subr.mxu1 %v3184_v1 }
0x2c79   :  { %2870 = vmatpush3.msra.mxu1 %v2337_v53 }
0x2c7a   :  { %2871 = vmatprep.subr.mxu1 %v3184_v1 }
0x2c7b   :  { %2872 = vmatpush3.msra.mxu1 %v2336_v55 }
0x2c7c   :  { %2873 = vmatprep.subr.mxu1 %v3184_v1 }
0x2c7d   :  { %2874 = vmatpush3.msra.mxu1 %v2335_v5 }
0x2d2e   :  { %v2603_v48 = vpop.f32.mrf.mxu1 }
0x2d30   :  { %v2604_v49 = vpop.f32.mrf.mxu1 }
0x2d31   :  { %v2605_v56 = vadd.f32 %v2604_v49, %v2603_v48 }
0x2d33   :  { %v2237_v50 = vadd.f32 %v2605_v56, %v2477_v54 }
0x2d35   :  { %v2240_v51 = vmax.f32 %v2237_v50, 0.0 }
0x2d37   :  { %2857 = vmatmul.mubr.f32.vlgmr.msra.gmra.mxu0 %v2240_v51 }
0x2df7   :  { %v2330_v6 = vpop.f32.mrf.mxu0 }
0x2df8   :  { %v2331_v58 = vadd.f32 %v2478_v57, %v2330_v6 }
0x2df9   :  { %v2858_v59 = vpop.f32.mrf.mxu0 }
0x2dfa   :  { %v2334_v7 = vmax.f32 %v2331_v58, 0.0 }
0x2dfc   :  { %2876 = vmatmul.mubr.msk.f32.vlgmr.msra.gmra.mxu1 %vm2350_vm6, %v2334_v7 }
0x2ebc   :  { %v2420_v61 = vpop.f32.mrf.mxu1 }
0x2ebd   :  { %v2421_v8 = vadd.f32 %v2479_v60, %v2420_v61 }
0x2ebe   :  { %v2877_v63 = vpop.f32.mrf.mxu1 }
0x2ebf   :  { %v2481_v2 = vmul.f32 -1.442695, %v2421_v8 }
0x2ec1   :  { %3021 = vpow2.f32 %v2481_v2 }
0x2ece   :  { %v3022_v3 = vpop.eup %3021 }
0x2ecf   :  { %v2427_v1 = vadd.f32 1.0, %v3022_v3 }
0x2ed1   :  { %3023 = vrcp.f32 %v2427_v1 }
0x2ede   :  { %v3024_v4 = vpop.eup %3023 }
0x2edf   :  { %2431 = vst.msk [vmem:[%s3691_s15] sm:$0x3] %vm2430_vm7, %v3024_v4 }
0x2ee0   :  { %2436 = vsyncpa [#allocation4], 1 }
0x2ee1   :  { %2437 = vsyncpa [#allocation6], 1 }
0x2ee2   :  { %2438 = vsyncpa [#allocation9], 1 }
0x2ee3   :  { %2439 = vsyncpa [#allocation12], 1 }

</bundles_post_ra>
